<compile_context>
chip_gen: v7x
topology: tpu7x:2x2x1
jax: 0.10.0
libtpu: 0.0.40
codegen_flags: <defaults>
</compile_context>

<pallas_src>
import functools

import jax
import jax.numpy as jnp
from jax import lax
from jax.experimental import pallas as pl
from jax.experimental.pallas import tpu as pltpu


# ----------------------------------------------------------------------------
# helpers
# ----------------------------------------------------------------------------
def _divisor_chunk(n, target, multiple=1):
    """Largest d <= target dividing n with d % multiple == 0 (or d == n)."""
    target = max(1, min(n, target))
    for d in range(target, 0, -1):
        if n % d == 0 and (d % multiple == 0 or d == n):
            return d
    return n


# ----------------------------------------------------------------------------
# 1) Input projection: gates_x = x @ W_ih^T + (b_ih + b_hh)     (parallel grid)
# ----------------------------------------------------------------------------
def input_proj_kernel(x_ref, w_ref, b_ref, gx_ref):
    T, B, E = x_ref.shape
    G = gx_ref.shape[-1]                                     # 4H
    x = x_ref[...].astype(jnp.float32).reshape(T * B, E)     # (T*B, E)
    g = jnp.dot(x, w_ref[...], preferred_element_type=jnp.float32) + b_ref[...]
    gx_ref[...] = g.reshape(T, B, G)


def lstm_input_proj(x, w_ih, b_ih, b_hh):
    """x: (S, B, E) -> gates_x: (S, B, 4H) in f32."""
    S, B, E = x.shape
    G = w_ih.shape[0]                                        # 4H
    w = w_ih.T.astype(jnp.float32)                           # (E, 4H)
    bias = (b_ih + b_hh).reshape(1, G).astype(jnp.float32)   # (1, 4H)

    # Aim for >= ~256 matmul rows per grid step so the MXU is actually fed.
    Tp = _divisor_chunk(S, max(1, 256 // max(B, 1)))
    grid = (S // Tp,)

    return pl.pallas_call(
        input_proj_kernel,
        out_shape=jax.ShapeDtypeStruct((S, B, G), jnp.float32),
        grid_spec=pltpu.PrefetchScalarGridSpec(
            num_scalar_prefetch=0,
            grid=grid,
            in_specs=[
                pl.BlockSpec((Tp, B, E), lambda s: (s, 0, 0)),   # x chunk
                pl.BlockSpec((E, G), lambda s: (0, 0)),           # W_ih^T
                pl.BlockSpec((1, G), lambda s: (0, 0)),           # bias
            ],
            out_specs=pl.BlockSpec((Tp, B, G), lambda s: (s, 0, 0)),
        ),
        compiler_params=pltpu.CompilerParams(
            dimension_semantics=("parallel",)),
    )(x, w, bias)


# ----------------------------------------------------------------------------
# 2) Recurrence: per time chunk, unrolled loop of h @ W_hh^T + gates_x[t]
# ----------------------------------------------------------------------------
def lstm_recurrence_kernel(gx_ref, h0_ref, c0_ref, whh_ref,
                           y_ref, hn_ref, cn_ref, h_scr, c_scr):
    s = pl.program_id(0)
    T = gx_ref.shape[0]
    H = h_scr.shape[-1]

    @pl.when(s == 0)
    def _():
        h_scr[...] = h0_ref[...].astype(jnp.float32)
        c_scr[...] = c0_ref[...].astype(jnp.float32)

    # Loop-invariant weight load hoisted out of the timestep loop.
    whh = whh_ref[...]                                       # (H, 4H) f32

    def step(t, carry):
        h = h_scr[...]
        c = c_scr[...]
        # gate pre-activations, PyTorch gate order [i, f, g, o] -> (B, 4H)
        gates = gx_ref[t] + jnp.dot(h, whh,
                                    preferred_element_type=jnp.float32)
        i_g = jax.nn.sigmoid(gates[:, 0 * H:1 * H])
        f_g = jax.nn.sigmoid(gates[:, 1 * H:2 * H])
        g_g = jnp.tanh(gates[:, 2 * H:3 * H])
        o_g = jax.nn.sigmoid(gates[:, 3 * H:4 * H])

        c_new = f_g * c + i_g * g_g
        h_new = o_g * jnp.tanh(c_new)

        h_scr[...] = h_new
        c_scr[...] = c_new
        y_ref[t] = h_new.astype(y_ref.dtype)
        return carry

    lax.fori_loop(0, T, step, 0, unroll=True)

    @pl.when(s == pl.num_programs(0) - 1)
    def _():
        hn_ref[...] = h_scr[...].astype(hn_ref.dtype)
        cn_ref[...] = c_scr[...].astype(cn_ref.dtype)


def lstm_recurrence(gates_x, h0, c0, w_hh, out_dtype):
    """gates_x: (S, B, 4H) f32 -> (y (S,B,H), h_n (B,H), c_n (B,H))."""
    S, B, G = gates_x.shape
    H = w_hh.shape[1]
    w = w_hh.T.astype(jnp.float32)                           # (H, 4H)

    T = _divisor_chunk(S, 16)                                # unrolled inner loop
    grid = (S // T,)

    y, hn, cn = pl.pallas_call(
        lstm_recurrence_kernel,
        out_shape=(
            jax.ShapeDtypeStruct((S, B, H), out_dtype),
            jax.ShapeDtypeStruct((B, H), out_dtype),
            jax.ShapeDtypeStruct((B, H), out_dtype),
        ),
        grid_spec=pltpu.PrefetchScalarGridSpec(
            num_scalar_prefetch=0,
            grid=grid,
            in_specs=[
                pl.BlockSpec((T, B, G), lambda s: (s, 0, 0)),    # gates_x chunk
                pl.BlockSpec((B, H), lambda s: (0, 0)),          # h0
                pl.BlockSpec((B, H), lambda s: (0, 0)),          # c0
                pl.BlockSpec((H, G), lambda s: (0, 0)),          # W_hh^T
            ],
            out_specs=[
                pl.BlockSpec((T, B, H), lambda s: (s, 0, 0)),    # y chunk
                pl.BlockSpec((B, H), lambda s: (0, 0)),          # h_n
                pl.BlockSpec((B, H), lambda s: (0, 0)),          # c_n
            ],
            scratch_shapes=[
                pltpu.VMEM((B, H), jnp.float32),                 # h state
                pltpu.VMEM((B, H), jnp.float32),                 # c state
            ],
        ),
        compiler_params=pltpu.CompilerParams(
            dimension_semantics=("arbitrary",)),
    )(gates_x, h0, c0, w)
    return y, hn, cn


# ----------------------------------------------------------------------------
# 3) Head: sigmoid(tanh(y) @ W1^T + b1) via VPU mul + lane reduce, blocked on S
# ----------------------------------------------------------------------------
def head_kernel(y_ref, w_ref, b_ref, o_ref):
    y = jnp.tanh(y_ref[...].astype(jnp.float32))             # (T, B, H)
    w = w_ref[...]                                           # (1, H)
    z = jnp.sum(y * w[0], axis=-1) + b_ref[0]                # (T, B)
    o_ref[...] = jax.nn.sigmoid(z).astype(o_ref.dtype)


def head(y, w1, b1):
    S, B, H = y.shape
    T = _divisor_chunk(S, 128, multiple=8)
    grid = (S // T,)

    out2d = pl.pallas_call(
        head_kernel,
        out_shape=jax.ShapeDtypeStruct((S, B), y.dtype),
        grid_spec=pltpu.PrefetchScalarGridSpec(
            num_scalar_prefetch=0,
            grid=grid,
            in_specs=[
                pl.BlockSpec((T, B, H), lambda s: (s, 0, 0)),        # y chunk
                pl.BlockSpec((1, H), lambda s: (0, 0)),              # W1
                pl.BlockSpec(memory_space=pltpu.MemorySpace.SMEM),   # b1 scalar
            ],
            out_specs=pl.BlockSpec((T, B), lambda s: (s, 0)),
        ),
        compiler_params=pltpu.CompilerParams(
            dimension_semantics=("parallel",)),
    )(y, w1.astype(jnp.float32), b1.astype(jnp.float32))
    return out2d.reshape(S, B, 1)


# ----------------------------------------------------------------------------
# Model: parameter init + forward
# ----------------------------------------------------------------------------
def init_params(key, embedding_dim, lstm_dim, lstm_layer):
    params = {"lstm": [], "w1": None, "b1": None}
    k = 1.0 / jnp.sqrt(jnp.float32(lstm_dim))
    keys = jax.random.split(key, 4 * lstm_layer + 2)
    for l in range(lstm_layer):
        in_dim = embedding_dim if l == 0 else lstm_dim
        w_ih = jax.random.uniform(keys[4 * l + 0], (4 * lstm_dim, in_dim),
                                  jnp.float32, -k, k)
        w_hh = jax.random.uniform(keys[4 * l + 1], (4 * lstm_dim, lstm_dim),
                                  jnp.float32, -k, k)
        b_ih = jax.random.uniform(keys[4 * l + 2], (4 * lstm_dim,),
                                  jnp.float32, -k, k)
        b_hh = jax.random.uniform(keys[4 * l + 3], (4 * lstm_dim,),
                                  jnp.float32, -k, k)
        params["lstm"].append((w_ih, w_hh, b_ih, b_hh))
    params["w1"] = jax.random.uniform(keys[-2], (1, lstm_dim),
                                      jnp.float32, -k, k)
    params["b1"] = jax.random.uniform(keys[-1], (1,), jnp.float32, -k, k)
    return params


def lstm_model_forward(params, x, hidden):
    h0, c0 = hidden                     # each (L, B, H)
    num_layers = h0.shape[0]
    hs, cs = [], []
    inp = x
    for l in range(num_layers):
        w_ih, w_hh, b_ih, b_hh = params["lstm"][l]
        gates_x = lstm_input_proj(inp, w_ih, b_ih, b_hh)     # big parallel matmul
        inp, hn, cn = lstm_recurrence(gates_x, h0[l], c0[l], w_hh, x.dtype)
        hs.append(hn)
        cs.append(cn)
    out = head(inp, params["w1"], params["b1"])
    return out, (jnp.stack(hs), jnp.stack(cs))


# ----------------------------------------------------------------------------
# Pure-JAX reference (for correctness check only)
# ----------------------------------------------------------------------------
def ref_forward(params, x, hidden):
    h0, c0 = hidden
    inp = x
    hs, cs = [], []
    for l, (w_ih, w_hh, b_ih, b_hh) in enumerate(params["lstm"]):
        H = w_hh.shape[1]

        def step(carry, xt, w_ih=w_ih, w_hh=w_hh, b_ih=b_ih, b_hh=b_hh, H=H):
            h, c = carry
            g = xt @ w_ih.T + b_ih + h @ w_hh.T + b_hh
            i = jax.nn.sigmoid(g[:, :H])
            f = jax.nn.sigmoid(g[:, H:2 * H])
            gg = jnp.tanh(g[:, 2 * H:3 * H])
            o = jax.nn.sigmoid(g[:, 3 * H:])
            c2 = f * c + i * gg
            h2 = o * jnp.tanh(c2)
            return (h2, c2), h2

        (hn, cn), ys = jax.lax.scan(step, (h0[l], c0[l]), inp)
        hs.append(hn)
        cs.append(cn)
        inp = ys
    z = jax.nn.sigmoid(jnp.tanh(inp) @ params["w1"].T + params["b1"])
    return z, (jnp.stack(hs), jnp.stack(cs))


# ----------------------------------------------------------------------------
if __name__ == "__main__":
    embedding_dim, lstm_dim, lstm_layers = 16, 32, 2
    seq_len, batch = 8, 2

    key = jax.random.PRNGKey(0)
    kp, kx, kh, kc = jax.random.split(key, 4)

    params = init_params(kp, embedding_dim, lstm_dim, lstm_layers)
    x = jax.random.normal(kx, (seq_len, batch, embedding_dim), jnp.float32)
    h0 = jax.random.normal(kh, (lstm_layers, batch, lstm_dim), jnp.float32)
    c0 = jax.random.normal(kc, (lstm_layers, batch, lstm_dim), jnp.float32)

    fwd = jax.jit(functools.partial(lstm_model_forward, params))
    out, (h_n, c_n) = fwd(x, (h0, c0))
    jax.block_until_ready((out, h_n, c_n))

    # sanity check vs pure-JAX reference
    ref_out, (ref_h, ref_c) = ref_forward(params, x, (h0, c0))
    assert out.shape == (seq_len, batch, 1)
    assert h_n.shape == (lstm_layers, batch, lstm_dim)
    assert c_n.shape == (lstm_layers, batch, lstm_dim)
    assert jnp.allclose(out, ref_out, atol=1e-5), "output mismatch"
    assert jnp.allclose(h_n, ref_h, atol=1e-5), "h_n mismatch"
    assert jnp.allclose(c_n, ref_c, atol=1e-5), "c_n mismatch"

    print("KERNEL_OK")
</pallas_src>

<mosaic_0001>
module attributes {stable_mosaic.version = 11 : i64} {
  func.func @input_proj_kernel(%arg0: i32, %arg1: memref<8x2x16xf32, #tpu.memory_space<vmem>>, %arg2: memref<16x128xf32, #tpu.memory_space<vmem>>, %arg3: memref<1x128xf32, #tpu.memory_space<vmem>>, %arg4: memref<8x2x128xf32, #tpu.memory_space<vmem>>) attributes {dimension_semantics = [#tpu.dimension_semantics<parallel>], iteration_bounds = array<i64: 1>, scalar_prefetch = 0 : i64, scratch_operands = 0 : i64, tpu.core_type = #tpu.core_type<tc>, window_params = [{transform_indices = @transform_0, window_bounds = array<i64: 8, 2, 16>}, {pipeline_mode = #tpu.pipeline_mode<synchronous>, transform_indices = @transform_1, window_bounds = array<i64: 16, 128>}, {pipeline_mode = #tpu.pipeline_mode<synchronous>, transform_indices = @transform_2, window_bounds = array<i64: 1, 128>}, {transform_indices = @transform_3, window_bounds = array<i64: 8, 2, 128>}]} {
    %c0 = arith.constant 0 : index
    %c0_0 = arith.constant 0 : index
    %c0_1 = arith.constant 0 : index
    %0 = vector.load %arg1[%c0, %c0_0, %c0_1] : memref<8x2x16xf32, #tpu.memory_space<vmem>>, vector<8x2x16xf32>
    %1 = vector.shape_cast %0 : vector<8x2x16xf32> to vector<16x16xf32>
    %c0_2 = arith.constant 0 : index
    %c0_3 = arith.constant 0 : index
    %2 = vector.load %arg2[%c0_2, %c0_3] : memref<16x128xf32, #tpu.memory_space<vmem>>, vector<16x128xf32>
    %cst = arith.constant dense<0.000000e+00> : vector<16x128xf32>
    %3 = tpu.matmul %1, %2, %cst {dimension_numbers = #tpu.dot_dimension_numbers<[1], [0], [0], [1], [0, 0, 1, 1], [], []>} : vector<16x16xf32>, vector<16x128xf32>, vector<16x128xf32> -> vector<16x128xf32>
    %c0_4 = arith.constant 0 : index
    %c0_5 = arith.constant 0 : index
    %4 = vector.load %arg3[%c0_4, %c0_5] : memref<1x128xf32, #tpu.memory_space<vmem>>, vector<1x128xf32>
    %5 = vector.broadcast %4 : vector<1x128xf32> to vector<16x128xf32>
    %6 = arith.addf %3, %5 : vector<16x128xf32>
    %7 = vector.shape_cast %6 : vector<16x128xf32> to vector<8x2x128xf32>
    %c0_6 = arith.constant 0 : index
    %c0_7 = arith.constant 0 : index
    %c0_8 = arith.constant 0 : index
    %8 = vector.load %arg4[%c0_6, %c0_7, %c0_8] : memref<8x2x128xf32, #tpu.memory_space<vmem>>, vector<8x2x128xf32>
    tpu.vector_store %arg4[%c0_6, %c0_7, %c0_8], %7 {strides = array<i32>} : memref<8x2x128xf32, #tpu.memory_space<vmem>>, vector<8x2x128xf32>,
    return
  }
  func.func @transform_0(%arg0: i32) -> (i32, i32, i32) {
    %c0_i32 = arith.constant 0 : i32
    %c0_i32_0 = arith.constant 0 : i32
    %c0_i32_1 = arith.constant 0 : i32
    return %arg0, %c0_i32, %c0_i32_0 : i32, i32, i32
  }
  func.func @transform_1(%arg0: i32) -> (i32, i32) {
    %c0_i32 = arith.constant 0 : i32
    %c0_i32_0 = arith.constant 0 : i32
    %c0_i32_1 = arith.constant 0 : i32
    return %c0_i32, %c0_i32_0 : i32, i32
  }
  func.func @transform_2(%arg0: i32) -> (i32, i32) {
    %c0_i32 = arith.constant 0 : i32
    %c0_i32_0 = arith.constant 0 : i32
    %c0_i32_1 = arith.constant 0 : i32
    return %c0_i32, %c0_i32_0 : i32, i32
  }
  func.func @transform_3(%arg0: i32) -> (i32, i32, i32) {
    %c0_i32 = arith.constant 0 : i32
    %c0_i32_0 = arith.constant 0 : i32
    %c0_i32_1 = arith.constant 0 : i32
    return %arg0, %c0_i32, %c0_i32_0 : i32, i32, i32
  }
}

module attributes {stable_mosaic.version = 11 : i64} {
  func.func @input_proj_kernel(%arg0: i32, %arg1: memref<8x2x32xf32, #tpu.memory_space<vmem>>, %arg2: memref<32x128xf32, #tpu.memory_space<vmem>>, %arg3: memref<1x128xf32, #tpu.memory_space<vmem>>, %arg4: memref<8x2x128xf32, #tpu.memory_space<vmem>>) attributes {dimension_semantics = [#tpu.dimension_semantics<parallel>], iteration_bounds = array<i64: 1>, scalar_prefetch = 0 : i64, scratch_operands = 0 : i64, tpu.core_type = #tpu.core_type<tc>, window_params = [{transform_indices = @transform_0, window_bounds = array<i64: 8, 2, 32>}, {pipeline_mode = #tpu.pipeline_mode<synchronous>, transform_indices = @transform_1, window_bounds = array<i64: 32, 128>}, {pipeline_mode = #tpu.pipeline_mode<synchronous>, transform_indices = @transform_2, window_bounds = array<i64: 1, 128>}, {transform_indices = @transform_3, window_bounds = array<i64: 8, 2, 128>}]} {
    %c0 = arith.constant 0 : index
    %c0_0 = arith.constant 0 : index
    %c0_1 = arith.constant 0 : index
    %0 = vector.load %arg1[%c0, %c0_0, %c0_1] : memref<8x2x32xf32, #tpu.memory_space<vmem>>, vector<8x2x32xf32>
    %1 = vector.shape_cast %0 : vector<8x2x32xf32> to vector<16x32xf32>
    %c0_2 = arith.constant 0 : index
    %c0_3 = arith.constant 0 : index
    %2 = vector.load %arg2[%c0_2, %c0_3] : memref<32x128xf32, #tpu.memory_space<vmem>>, vector<32x128xf32>
    %cst = arith.constant dense<0.000000e+00> : vector<16x128xf32>
    %3 = tpu.matmul %1, %2, %cst {dimension_numbers = #tpu.dot_dimension_numbers<[1], [0], [0], [1], [0, 0, 1, 1], [], []>} : vector<16x32xf32>, vector<32x128xf32>, vector<16x128xf32> -> vector<16x128xf32>
    %c0_4 = arith.constant 0 : index
    %c0_5 = arith.constant 0 : index
    %4 = vector.load %arg3[%c0_4, %c0_5] : memref<1x128xf32, #tpu.memory_space<vmem>>, vector<1x128xf32>
    %5 = vector.broadcast %4 : vector<1x128xf32> to vector<16x128xf32>
    %6 = arith.addf %3, %5 : vector<16x128xf32>
    %7 = vector.shape_cast %6 : vector<16x128xf32> to vector<8x2x128xf32>
    %c0_6 = arith.constant 0 : index
    %c0_7 = arith.constant 0 : index
    %c0_8 = arith.constant 0 : index
    %8 = vector.load %arg4[%c0_6, %c0_7, %c0_8] : memref<8x2x128xf32, #tpu.memory_space<vmem>>, vector<8x2x128xf32>
    tpu.vector_store %arg4[%c0_6, %c0_7, %c0_8], %7 {strides = array<i32>} : memref<8x2x128xf32, #tpu.memory_space<vmem>>, vector<8x2x128xf32>,
    return
  }
  func.func @transform_0(%arg0: i32) -> (i32, i32, i32) {
    %c0_i32 = arith.constant 0 : i32
    %c0_i32_0 = arith.constant 0 : i32
    %c0_i32_1 = arith.constant 0 : i32
    return %arg0, %c0_i32, %c0_i32_0 : i32, i32, i32
  }
  func.func @transform_1(%arg0: i32) -> (i32, i32) {
    %c0_i32 = arith.constant 0 : i32
    %c0_i32_0 = arith.constant 0 : i32
    %c0_i32_1 = arith.constant 0 : i32
    return %c0_i32, %c0_i32_0 : i32, i32
  }
  func.func @transform_2(%arg0: i32) -> (i32, i32) {
    %c0_i32 = arith.constant 0 : i32
    %c0_i32_0 = arith.constant 0 : i32
    %c0_i32_1 = arith.constant 0 : i32
    return %c0_i32, %c0_i32_0 : i32, i32
  }
  func.func @transform_3(%arg0: i32) -> (i32, i32, i32) {
    %c0_i32 = arith.constant 0 : i32
    %c0_i32_0 = arith.constant 0 : i32
    %c0_i32_1 = arith.constant 0 : i32
    return %arg0, %c0_i32, %c0_i32_0 : i32, i32, i32
  }
}

module attributes {stable_mosaic.version = 11 : i64} {
  func.func @lstm_recurrence_kernel(%arg0: i32, %arg1: memref<8x2x128xf32, #tpu.memory_space<vmem>>, %arg2: memref<2x32xf32, #tpu.memory_space<vmem>>, %arg3: memref<2x32xf32, #tpu.memory_space<vmem>>, %arg4: memref<32x128xf32, #tpu.memory_space<vmem>>, %arg5: memref<8x2x32xf32, #tpu.memory_space<vmem>>, %arg6: memref<2x32xf32, #tpu.memory_space<vmem>>, %arg7: memref<2x32xf32, #tpu.memory_space<vmem>>, %arg8: memref<2x32xf32, #tpu.memory_space<vmem>>, %arg9: memref<2x32xf32, #tpu.memory_space<vmem>>) attributes {dimension_semantics = [#tpu.dimension_semantics<arbitrary>], iteration_bounds = array<i64: 1>, scalar_prefetch = 0 : i64, scratch_operands = 2 : i64, tpu.core_type = #tpu.core_type<tc>, window_params = [{transform_indices = @transform_0, window_bounds = array<i64: 8, 2, 128>}, {pipeline_mode = #tpu.pipeline_mode<synchronous>, transform_indices = @transform_1, window_bounds = array<i64: 2, 32>}, {pipeline_mode = #tpu.pipeline_mode<synchronous>, transform_indices = @transform_2, window_bounds = array<i64: 2, 32>}, {pipeline_mode = #tpu.pipeline_mode<synchronous>, transform_indices = @transform_3, window_bounds = array<i64: 32, 128>}, {transform_indices = @transform_4, window_bounds = array<i64: 8, 2, 32>}, {pipeline_mode = #tpu.pipeline_mode<synchronous>, transform_indices = @transform_5, window_bounds = array<i64: 2, 32>}, {pipeline_mode = #tpu.pipeline_mode<synchronous>, transform_indices = @transform_6, window_bounds = array<i64: 2, 32>}]} {
    %c0_i32 = arith.constant 0 : i32
    %0 = arith.cmpi eq, %arg0, %c0_i32 : i32
    %1 = arith.extui %0 : i1 to i32
    %c0_i32_0 = arith.constant 0 : i32
    %2 = arith.cmpi ne, %1, %c0_i32_0 : i32
    scf.if %2 {
      %c0_132 = arith.constant 0 : index
      %c0_133 = arith.constant 0 : index
      %311 = vector.load %arg2[%c0_132, %c0_133] : memref<2x32xf32, #tpu.memory_space<vmem>>, vector<2x32xf32>
      %c0_134 = arith.constant 0 : index
      %c0_135 = arith.constant 0 : index
      %312 = vector.load %arg8[%c0_134, %c0_135] : memref<2x32xf32, #tpu.memory_space<vmem>>, vector<2x32xf32>
      tpu.vector_store %arg8[%c0_134, %c0_135], %311 {strides = array<i32>} : memref<2x32xf32, #tpu.memory_space<vmem>>, vector<2x32xf32>,
      %c0_136 = arith.constant 0 : index
      %c0_137 = arith.constant 0 : index
      %313 = vector.load %arg3[%c0_136, %c0_137] : memref<2x32xf32, #tpu.memory_space<vmem>>, vector<2x32xf32>
      %c0_138 = arith.constant 0 : index
      %c0_139 = arith.constant 0 : index
      %314 = vector.load %arg9[%c0_138, %c0_139] : memref<2x32xf32, #tpu.memory_space<vmem>>, vector<2x32xf32>
      tpu.vector_store %arg9[%c0_138, %c0_139], %313 {strides = array<i32>} : memref<2x32xf32, #tpu.memory_space<vmem>>, vector<2x32xf32>,
    } else {
    }
    %c0 = arith.constant 0 : index
    %c0_1 = arith.constant 0 : index
    %3 = vector.load %arg4[%c0, %c0_1] : memref<32x128xf32, #tpu.memory_space<vmem>>, vector<32x128xf32>
    %c0_i32_2 = arith.constant 0 : i32
    %c0_3 = arith.constant 0 : index
    %c0_4 = arith.constant 0 : index
    %4 = vector.load %arg8[%c0_3, %c0_4] : memref<2x32xf32, #tpu.memory_space<vmem>>, vector<2x32xf32>
    %c0_5 = arith.constant 0 : index
    %c0_6 = arith.constant 0 : index
    %5 = vector.load %arg9[%c0_5, %c0_6] : memref<2x32xf32, #tpu.memory_space<vmem>>, vector<2x32xf32>
    %6 = arith.index_cast %c0_i32_2 : i32 to index
    %c0_7 = arith.constant 0 : index
    %c0_8 = arith.constant 0 : index
    %7 = vector.load %arg1[%6, %c0_7, %c0_8] : memref<8x2x128xf32, #tpu.memory_space<vmem>>, vector<1x2x128xf32>
    %8 = vector.shape_cast %7 : vector<1x2x128xf32> to vector<2x128xf32>
    %cst = arith.constant dense<0.000000e+00> : vector<2x128xf32>
    %9 = tpu.matmul %4, %3, %cst {dimension_numbers = #tpu.dot_dimension_numbers<[1], [0], [0], [1], [0, 0, 1, 1], [], []>} : vector<2x32xf32>, vector<32x128xf32>, vector<2x128xf32> -> vector<2x128xf32>
    %10 = arith.addf %8, %9 : vector<2x128xf32>
    %11 = vector.extract_strided_slice %10 {offsets = [0, 0], sizes = [2, 32], strides = [1, 1]} : vector<2x128xf32> to vector<2x32xf32>
    %12 = arith.negf %11 : vector<2x32xf32>
    %13 = math.exp %12 : vector<2x32xf32>
    %cst_9 = arith.constant 1.000000e+00 : f32
    %14 = vector.broadcast %cst_9 : f32 to vector<2x32xf32>
    %15 = arith.addf %14, %13 : vector<2x32xf32>
    %16 = arith.divf %14, %15 : vector<2x32xf32>
    %17 = vector.extract_strided_slice %10 {offsets = [0, 32], sizes = [2, 32], strides = [1, 1]} : vector<2x128xf32> to vector<2x32xf32>
    %18 = arith.negf %17 : vector<2x32xf32>
    %19 = math.exp %18 : vector<2x32xf32>
    %cst_10 = arith.constant 1.000000e+00 : f32
    %20 = vector.broadcast %cst_10 : f32 to vector<2x32xf32>
    %21 = arith.addf %20, %19 : vector<2x32xf32>
    %22 = arith.divf %20, %21 : vector<2x32xf32>
    %23 = vector.extract_strided_slice %10 {offsets = [0, 64], sizes = [2, 32], strides = [1, 1]} : vector<2x128xf32> to vector<2x32xf32>
    %24 = math.tanh %23 : vector<2x32xf32>
    %25 = vector.extract_strided_slice %10 {offsets = [0, 96], sizes = [2, 32], strides = [1, 1]} : vector<2x128xf32> to vector<2x32xf32>
    %26 = arith.negf %25 : vector<2x32xf32>
    %27 = math.exp %26 : vector<2x32xf32>
    %cst_11 = arith.constant 1.000000e+00 : f32
    %28 = vector.broadcast %cst_11 : f32 to vector<2x32xf32>
    %29 = arith.addf %28, %27 : vector<2x32xf32>
    %30 = arith.divf %28, %29 : vector<2x32xf32>
    %31 = arith.mulf %22, %5 : vector<2x32xf32>
    %32 = arith.mulf %16, %24 : vector<2x32xf32>
    %33 = arith.addf %31, %32 : vector<2x32xf32>
    %34 = math.tanh %33 : vector<2x32xf32>
    %35 = arith.mulf %30, %34 : vector<2x32xf32>
    %c0_12 = arith.constant 0 : index
    %c0_13 = arith.constant 0 : index
    %36 = vector.load %arg8[%c0_12, %c0_13] : memref<2x32xf32, #tpu.memory_space<vmem>>, vector<2x32xf32>
    tpu.vector_store %arg8[%c0_12, %c0_13], %35 {strides = array<i32>} : memref<2x32xf32, #tpu.memory_space<vmem>>, vector<2x32xf32>,
    %c0_14 = arith.constant 0 : index
    %c0_15 = arith.constant 0 : index
    %37 = vector.load %arg9[%c0_14, %c0_15] : memref<2x32xf32, #tpu.memory_space<vmem>>, vector<2x32xf32>
    tpu.vector_store %arg9[%c0_14, %c0_15], %33 {strides = array<i32>} : memref<2x32xf32, #tpu.memory_space<vmem>>, vector<2x32xf32>,
    %38 = arith.index_cast %c0_i32_2 : i32 to index
    %c0_16 = arith.constant 0 : index
    %c0_17 = arith.constant 0 : index
    %39 = vector.load %arg5[%38, %c0_16, %c0_17] : memref<8x2x32xf32, #tpu.memory_space<vmem>>, vector<1x2x32xf32>
    %40 = vector.shape_cast %39 : vector<1x2x32xf32> to vector<2x32xf32>
    %41 = vector.shape_cast %35 : vector<2x32xf32> to vector<1x2x32xf32>
    tpu.vector_store %arg5[%38, %c0_16, %c0_17], %41 {strides = array<i32>} : memref<8x2x32xf32, #tpu.memory_space<vmem>>, vector<1x2x32xf32>,
    %c1_i32 = arith.constant 1 : i32
    %c0_18 = arith.constant 0 : index
    %c0_19 = arith.constant 0 : index
    %42 = vector.load %arg8[%c0_18, %c0_19] : memref<2x32xf32, #tpu.memory_space<vmem>>, vector<2x32xf32>
    %c0_20 = arith.constant 0 : index
    %c0_21 = arith.constant 0 : index
    %43 = vector.load %arg9[%c0_20, %c0_21] : memref<2x32xf32, #tpu.memory_space<vmem>>, vector<2x32xf32>
    %44 = arith.index_cast %c1_i32 : i32 to index
    %c0_22 = arith.constant 0 : index
    %c0_23 = arith.constant 0 : index
    %45 = vector.load %arg1[%44, %c0_22, %c0_23] : memref<8x2x128xf32, #tpu.memory_space<vmem>>, vector<1x2x128xf32>
    %46 = vector.shape_cast %45 : vector<1x2x128xf32> to vector<2x128xf32>
    %cst_24 = arith.constant dense<0.000000e+00> : vector<2x128xf32>
    %47 = tpu.matmul %42, %3, %cst_24 {dimension_numbers = #tpu.dot_dimension_numbers<[1], [0], [0], [1], [0, 0, 1, 1], [], []>} : vector<2x32xf32>, vector<32x128xf32>, vector<2x128xf32> -> vector<2x128xf32>
    %48 = arith.addf %46, %47 : vector<2x128xf32>
    %49 = vector.extract_strided_slice %48 {offsets = [0, 0], sizes = [2, 32], strides = [1, 1]} : vector<2x128xf32> to vector<2x32xf32>
    %50 = arith.negf %49 : vector<2x32xf32>
    %51 = math.exp %50 : vector<2x32xf32>
    %cst_25 = arith.constant 1.000000e+00 : f32
    %52 = vector.broadcast %cst_25 : f32 to vector<2x32xf32>
    %53 = arith.addf %52, %51 : vector<2x32xf32>
    %54 = arith.divf %52, %53 : vector<2x32xf32>
    %55 = vector.extract_strided_slice %48 {offsets = [0, 32], sizes = [2, 32], strides = [1, 1]} : vector<2x128xf32> to vector<2x32xf32>
    %56 = arith.negf %55 : vector<2x32xf32>
    %57 = math.exp %56 : vector<2x32xf32>
    %cst_26 = arith.constant 1.000000e+00 : f32
    %58 = vector.broadcast %cst_26 : f32 to vector<2x32xf32>
    %59 = arith.addf %58, %57 : vector<2x32xf32>
    %60 = arith.divf %58, %59 : vector<2x32xf32>
    %61 = vector.extract_strided_slice %48 {offsets = [0, 64], sizes = [2, 32], strides = [1, 1]} : vector<2x128xf32> to vector<2x32xf32>
    %62 = math.tanh %61 : vector<2x32xf32>
    %63 = vector.extract_strided_slice %48 {offsets = [0, 96], sizes = [2, 32], strides = [1, 1]} : vector<2x128xf32> to vector<2x32xf32>
    %64 = arith.negf %63 : vector<2x32xf32>
    %65 = math.exp %64 : vector<2x32xf32>
    %cst_27 = arith.constant 1.000000e+00 : f32
    %66 = vector.broadcast %cst_27 : f32 to vector<2x32xf32>
    %67 = arith.addf %66, %65 : vector<2x32xf32>
    %68 = arith.divf %66, %67 : vector<2x32xf32>
    %69 = arith.mulf %60, %43 : vector<2x32xf32>
    %70 = arith.mulf %54, %62 : vector<2x32xf32>
    %71 = arith.addf %69, %70 : vector<2x32xf32>
    %72 = math.tanh %71 : vector<2x32xf32>
    %73 = arith.mulf %68, %72 : vector<2x32xf32>
    %c0_28 = arith.constant 0 : index
    %c0_29 = arith.constant 0 : index
    %74 = vector.load %arg8[%c0_28, %c0_29] : memref<2x32xf32, #tpu.memory_space<vmem>>, vector<2x32xf32>
    tpu.vector_store %arg8[%c0_28, %c0_29], %73 {strides = array<i32>} : memref<2x32xf32, #tpu.memory_space<vmem>>, vector<2x32xf32>,
    %c0_30 = arith.constant 0 : index
    %c0_31 = arith.constant 0 : index
    %75 = vector.load %arg9[%c0_30, %c0_31] : memref<2x32xf32, #tpu.memory_space<vmem>>, vector<2x32xf32>
    tpu.vector_store %arg9[%c0_30, %c0_31], %71 {strides = array<i32>} : memref<2x32xf32, #tpu.memory_space<vmem>>, vector<2x32xf32>,
    %76 = arith.index_cast %c1_i32 : i32 to index
    %c0_32 = arith.constant 0 : index
    %c0_33 = arith.constant 0 : index
    %77 = vector.load %arg5[%76, %c0_32, %c0_33] : memref<8x2x32xf32, #tpu.memory_space<vmem>>, vector<1x2x32xf32>
    %78 = vector.shape_cast %77 : vector<1x2x32xf32> to vector<2x32xf32>
    %79 = vector.shape_cast %73 : vector<2x32xf32> to vector<1x2x32xf32>
    tpu.vector_store %arg5[%76, %c0_32, %c0_33], %79 {strides = array<i32>} : memref<8x2x32xf32, #tpu.memory_space<vmem>>, vector<1x2x32xf32>,
    %c2_i32 = arith.constant 2 : i32
    %c0_34 = arith.constant 0 : index
    %c0_35 = arith.constant 0 : index
    %80 = vector.load %arg8[%c0_34, %c0_35] : memref<2x32xf32, #tpu.memory_space<vmem>>, vector<2x32xf32>
    %c0_36 = arith.constant 0 : index
    %c0_37 = arith.constant 0 : index
    %81 = vector.load %arg9[%c0_36, %c0_37] : memref<2x32xf32, #tpu.memory_space<vmem>>, vector<2x32xf32>
    %82 = arith.index_cast %c2_i32 : i32 to index
    %c0_38 = arith.constant 0 : index
    %c0_39 = arith.constant 0 : index
    %83 = vector.load %arg1[%82, %c0_38, %c0_39] : memref<8x2x128xf32, #tpu.memory_space<vmem>>, vector<1x2x128xf32>
    %84 = vector.shape_cast %83 : vector<1x2x128xf32> to vector<2x128xf32>
    %cst_40 = arith.constant dense<0.000000e+00> : vector<2x128xf32>
    %85 = tpu.matmul %80, %3, %cst_40 {dimension_numbers = #tpu.dot_dimension_numbers<[1], [0], [0], [1], [0, 0, 1, 1], [], []>} : vector<2x32xf32>, vector<32x128xf32>, vector<2x128xf32> -> vector<2x128xf32>
    %86 = arith.addf %84, %85 : vector<2x128xf32>
    %87 = vector.extract_strided_slice %86 {offsets = [0, 0], sizes = [2, 32], strides = [1, 1]} : vector<2x128xf32> to vector<2x32xf32>
    %88 = arith.negf %87 : vector<2x32xf32>
    %89 = math.exp %88 : vector<2x32xf32>
    %cst_41 = arith.constant 1.000000e+00 : f32
    %90 = vector.broadcast %cst_41 : f32 to vector<2x32xf32>
    %91 = arith.addf %90, %89 : vector<2x32xf32>
    %92 = arith.divf %90, %91 : vector<2x32xf32>
    %93 = vector.extract_strided_slice %86 {offsets = [0, 32], sizes = [2, 32], strides = [1, 1]} : vector<2x128xf32> to vector<2x32xf32>
    %94 = arith.negf %93 : vector<2x32xf32>
    %95 = math.exp %94 : vector<2x32xf32>
    %cst_42 = arith.constant 1.000000e+00 : f32
    %96 = vector.broadcast %cst_42 : f32 to vector<2x32xf32>
    %97 = arith.addf %96, %95 : vector<2x32xf32>
    %98 = arith.divf %96, %97 : vector<2x32xf32>
    %99 = vector.extract_strided_slice %86 {offsets = [0, 64], sizes = [2, 32], strides = [1, 1]} : vector<2x128xf32> to vector<2x32xf32>
    %100 = math.tanh %99 : vector<2x32xf32>
    %101 = vector.extract_strided_slice %86 {offsets = [0, 96], sizes = [2, 32], strides = [1, 1]} : vector<2x128xf32> to vector<2x32xf32>
    %102 = arith.negf %101 : vector<2x32xf32>
    %103 = math.exp %102 : vector<2x32xf32>
    %cst_43 = arith.constant 1.000000e+00 : f32
    %104 = vector.broadcast %cst_43 : f32 to vector<2x32xf32>
    %105 = arith.addf %104, %103 : vector<2x32xf32>
    %106 = arith.divf %104, %105 : vector<2x32xf32>
    %107 = arith.mulf %98, %81 : vector<2x32xf32>
    %108 = arith.mulf %92, %100 : vector<2x32xf32>
    %109 = arith.addf %107, %108 : vector<2x32xf32>
    %110 = math.tanh %109 : vector<2x32xf32>
    %111 = arith.mulf %106, %110 : vector<2x32xf32>
    %c0_44 = arith.constant 0 : index
    %c0_45 = arith.constant 0 : index
    %112 = vector.load %arg8[%c0_44, %c0_45] : memref<2x32xf32, #tpu.memory_space<vmem>>, vector<2x32xf32>
    tpu.vector_store %arg8[%c0_44, %c0_45], %111 {strides = array<i32>} : memref<2x32xf32, #tpu.memory_space<vmem>>, vector<2x32xf32>,
    %c0_46 = arith.constant 0 : index
    %c0_47 = arith.constant 0 : index
    %113 = vector.load %arg9[%c0_46, %c0_47] : memref<2x32xf32, #tpu.memory_space<vmem>>, vector<2x32xf32>
    tpu.vector_store %arg9[%c0_46, %c0_47], %109 {strides = array<i32>} : memref<2x32xf32, #tpu.memory_space<vmem>>, vector<2x32xf32>,
    %114 = arith.index_cast %c2_i32 : i32 to index
    %c0_48 = arith.constant 0 : index
    %c0_49 = arith.constant 0 : index
    %115 = vector.load %arg5[%114, %c0_48, %c0_49] : memref<8x2x32xf32, #tpu.memory_space<vmem>>, vector<1x2x32xf32>
    %116 = vector.shape_cast %115 : vector<1x2x32xf32> to vector<2x32xf32>
    %117 = vector.shape_cast %111 : vector<2x32xf32> to vector<1x2x32xf32>
    tpu.vector_store %arg5[%114, %c0_48, %c0_49], %117 {strides = array<i32>} : memref<8x2x32xf32, #tpu.memory_space<vmem>>, vector<1x2x32xf32>,
    %c3_i32 = arith.constant 3 : i32
    %c0_50 = arith.constant 0 : index
    %c0_51 = arith.constant 0 : index
    %118 = vector.load %arg8[%c0_50, %c0_51] : memref<2x32xf32, #tpu.memory_space<vmem>>, vector<2x32xf32>
    %c0_52 = arith.constant 0 : index
    %c0_53 = arith.constant 0 : index
    %119 = vector.load %arg9[%c0_52, %c0_53] : memref<2x32xf32, #tpu.memory_space<vmem>>, vector<2x32xf32>
    %120 = arith.index_cast %c3_i32 : i32 to index
    %c0_54 = arith.constant 0 : index
    %c0_55 = arith.constant 0 : index
    %121 = vector.load %arg1[%120, %c0_54, %c0_55] : memref<8x2x128xf32, #tpu.memory_space<vmem>>, vector<1x2x128xf32>
    %122 = vector.shape_cast %121 : vector<1x2x128xf32> to vector<2x128xf32>
    %cst_56 = arith.constant dense<0.000000e+00> : vector<2x128xf32>
    %123 = tpu.matmul %118, %3, %cst_56 {dimension_numbers = #tpu.dot_dimension_numbers<[1], [0], [0], [1], [0, 0, 1, 1], [], []>} : vector<2x32xf32>, vector<32x128xf32>, vector<2x128xf32> -> vector<2x128xf32>
    %124 = arith.addf %122, %123 : vector<2x128xf32>
    %125 = vector.extract_strided_slice %124 {offsets = [0, 0], sizes = [2, 32], strides = [1, 1]} : vector<2x128xf32> to vector<2x32xf32>
    %126 = arith.negf %125 : vector<2x32xf32>
    %127 = math.exp %126 : vector<2x32xf32>
    %cst_57 = arith.constant 1.000000e+00 : f32
    %128 = vector.broadcast %cst_57 : f32 to vector<2x32xf32>
    %129 = arith.addf %128, %127 : vector<2x32xf32>
    %130 = arith.divf %128, %129 : vector<2x32xf32>
    %131 = vector.extract_strided_slice %124 {offsets = [0, 32], sizes = [2, 32], strides = [1, 1]} : vector<2x128xf32> to vector<2x32xf32>
    %132 = arith.negf %131 : vector<2x32xf32>
    %133 = math.exp %132 : vector<2x32xf32>
    %cst_58 = arith.constant 1.000000e+00 : f32
    %134 = vector.broadcast %cst_58 : f32 to vector<2x32xf32>
    %135 = arith.addf %134, %133 : vector<2x32xf32>
    %136 = arith.divf %134, %135 : vector<2x32xf32>
    %137 = vector.extract_strided_slice %124 {offsets = [0, 64], sizes = [2, 32], strides = [1, 1]} : vector<2x128xf32> to vector<2x32xf32>
    %138 = math.tanh %137 : vector<2x32xf32>
    %139 = vector.extract_strided_slice %124 {offsets = [0, 96], sizes = [2, 32], strides = [1, 1]} : vector<2x128xf32> to vector<2x32xf32>
    %140 = arith.negf %139 : vector<2x32xf32>
    %141 = math.exp %140 : vector<2x32xf32>
    %cst_59 = arith.constant 1.000000e+00 : f32
    %142 = vector.broadcast %cst_59 : f32 to vector<2x32xf32>
    %143 = arith.addf %142, %141 : vector<2x32xf32>
    %144 = arith.divf %142, %143 : vector<2x32xf32>
    %145 = arith.mulf %136, %119 : vector<2x32xf32>
    %146 = arith.mulf %130, %138 : vector<2x32xf32>
    %147 = arith.addf %145, %146 : vector<2x32xf32>
    %148 = math.tanh %147 : vector<2x32xf32>
    %149 = arith.mulf %144, %148 : vector<2x32xf32>
    %c0_60 = arith.constant 0 : index
    %c0_61 = arith.constant 0 : index
    %150 = vector.load %arg8[%c0_60, %c0_61] : memref<2x32xf32, #tpu.memory_space<vmem>>, vector<2x32xf32>
    tpu.vector_store %arg8[%c0_60, %c0_61], %149 {strides = array<i32>} : memref<2x32xf32, #tpu.memory_space<vmem>>, vector<2x32xf32>,
    %c0_62 = arith.constant 0 : index
    %c0_63 = arith.constant 0 : index
    %151 = vector.load %arg9[%c0_62, %c0_63] : memref<2x32xf32, #tpu.memory_space<vmem>>, vector<2x32xf32>
    tpu.vector_store %arg9[%c0_62, %c0_63], %147 {strides = array<i32>} : memref<2x32xf32, #tpu.memory_space<vmem>>, vector<2x32xf32>,
    %152 = arith.index_cast %c3_i32 : i32 to index
    %c0_64 = arith.constant 0 : index
    %c0_65 = arith.constant 0 : index
    %153 = vector.load %arg5[%152, %c0_64, %c0_65] : memref<8x2x32xf32, #tpu.memory_space<vmem>>, vector<1x2x32xf32>
    %154 = vector.shape_cast %153 : vector<1x2x32xf32> to vector<2x32xf32>
    %155 = vector.shape_cast %149 : vector<2x32xf32> to vector<1x2x32xf32>
    tpu.vector_store %arg5[%152, %c0_64, %c0_65], %155 {strides = array<i32>} : memref<8x2x32xf32, #tpu.memory_space<vmem>>, vector<1x2x32xf32>,
    %c4_i32 = arith.constant 4 : i32
    %c0_66 = arith.constant 0 : index
    %c0_67 = arith.constant 0 : index
    %156 = vector.load %arg8[%c0_66, %c0_67] : memref<2x32xf32, #tpu.memory_space<vmem>>, vector<2x32xf32>
    %c0_68 = arith.constant 0 : index
    %c0_69 = arith.constant 0 : index
    %157 = vector.load %arg9[%c0_68, %c0_69] : memref<2x32xf32, #tpu.memory_space<vmem>>, vector<2x32xf32>
    %158 = arith.index_cast %c4_i32 : i32 to index
    %c0_70 = arith.constant 0 : index
    %c0_71 = arith.constant 0 : index
    %159 = vector.load %arg1[%158, %c0_70, %c0_71] : memref<8x2x128xf32, #tpu.memory_space<vmem>>, vector<1x2x128xf32>
    %160 = vector.shape_cast %159 : vector<1x2x128xf32> to vector<2x128xf32>
    %cst_72 = arith.constant dense<0.000000e+00> : vector<2x128xf32>
    %161 = tpu.matmul %156, %3, %cst_72 {dimension_numbers = #tpu.dot_dimension_numbers<[1], [0], [0], [1], [0, 0, 1, 1], [], []>} : vector<2x32xf32>, vector<32x128xf32>, vector<2x128xf32> -> vector<2x128xf32>
    %162 = arith.addf %160, %161 : vector<2x128xf32>
    %163 = vector.extract_strided_slice %162 {offsets = [0, 0], sizes = [2, 32], strides = [1, 1]} : vector<2x128xf32> to vector<2x32xf32>
    %164 = arith.negf %163 : vector<2x32xf32>
    %165 = math.exp %164 : vector<2x32xf32>
    %cst_73 = arith.constant 1.000000e+00 : f32
    %166 = vector.broadcast %cst_73 : f32 to vector<2x32xf32>
    %167 = arith.addf %166, %165 : vector<2x32xf32>
    %168 = arith.divf %166, %167 : vector<2x32xf32>
    %169 = vector.extract_strided_slice %162 {offsets = [0, 32], sizes = [2, 32], strides = [1, 1]} : vector<2x128xf32> to vector<2x32xf32>
    %170 = arith.negf %169 : vector<2x32xf32>
    %171 = math.exp %170 : vector<2x32xf32>
    %cst_74 = arith.constant 1.000000e+00 : f32
    %172 = vector.broadcast %cst_74 : f32 to vector<2x32xf32>
    %173 = arith.addf %172, %171 : vector<2x32xf32>
    %174 = arith.divf %172, %173 : vector<2x32xf32>
    %175 = vector.extract_strided_slice %162 {offsets = [0, 64], sizes = [2, 32], strides = [1, 1]} : vector<2x128xf32> to vector<2x32xf32>
    %176 = math.tanh %175 : vector<2x32xf32>
    %177 = vector.extract_strided_slice %162 {offsets = [0, 96], sizes = [2, 32], strides = [1, 1]} : vector<2x128xf32> to vector<2x32xf32>
    %178 = arith.negf %177 : vector<2x32xf32>
    %179 = math.exp %178 : vector<2x32xf32>
    %cst_75 = arith.constant 1.000000e+00 : f32
    %180 = vector.broadcast %cst_75 : f32 to vector<2x32xf32>
    %181 = arith.addf %180, %179 : vector<2x32xf32>
    %182 = arith.divf %180, %181 : vector<2x32xf32>
    %183 = arith.mulf %174, %157 : vector<2x32xf32>
    %184 = arith.mulf %168, %176 : vector<2x32xf32>
    %185 = arith.addf %183, %184 : vector<2x32xf32>
    %186 = math.tanh %185 : vector<2x32xf32>
    %187 = arith.mulf %182, %186 : vector<2x32xf32>
    %c0_76 = arith.constant 0 : index
    %c0_77 = arith.constant 0 : index
    %188 = vector.load %arg8[%c0_76, %c0_77] : memref<2x32xf32, #tpu.memory_space<vmem>>, vector<2x32xf32>
    tpu.vector_store %arg8[%c0_76, %c0_77], %187 {strides = array<i32>} : memref<2x32xf32, #tpu.memory_space<vmem>>, vector<2x32xf32>,
    %c0_78 = arith.constant 0 : index
    %c0_79 = arith.constant 0 : index
    %189 = vector.load %arg9[%c0_78, %c0_79] : memref<2x32xf32, #tpu.memory_space<vmem>>, vector<2x32xf32>
    tpu.vector_store %arg9[%c0_78, %c0_79], %185 {strides = array<i32>} : memref<2x32xf32, #tpu.memory_space<vmem>>, vector<2x32xf32>,
    %190 = arith.index_cast %c4_i32 : i32 to index
    %c0_80 = arith.constant 0 : index
    %c0_81 = arith.constant 0 : index
    %191 = vector.load %arg5[%190, %c0_80, %c0_81] : memref<8x2x32xf32, #tpu.memory_space<vmem>>, vector<1x2x32xf32>
    %192 = vector.shape_cast %191 : vector<1x2x32xf32> to vector<2x32xf32>
    %193 = vector.shape_cast %187 : vector<2x32xf32> to vector<1x2x32xf32>
    tpu.vector_store %arg5[%190, %c0_80, %c0_81], %193 {strides = array<i32>} : memref<8x2x32xf32, #tpu.memory_space<vmem>>, vector<1x2x32xf32>,
    %c5_i32 = arith.constant 5 : i32
    %c0_82 = arith.constant 0 : index
    %c0_83 = arith.constant 0 : index
    %194 = vector.load %arg8[%c0_82, %c0_83] : memref<2x32xf32, #tpu.memory_space<vmem>>, vector<2x32xf32>
    %c0_84 = arith.constant 0 : index
    %c0_85 = arith.constant 0 : index
    %195 = vector.load %arg9[%c0_84, %c0_85] : memref<2x32xf32, #tpu.memory_space<vmem>>, vector<2x32xf32>
    %196 = arith.index_cast %c5_i32 : i32 to index
    %c0_86 = arith.constant 0 : index
    %c0_87 = arith.constant 0 : index
    %197 = vector.load %arg1[%196, %c0_86, %c0_87] : memref<8x2x128xf32, #tpu.memory_space<vmem>>, vector<1x2x128xf32>
    %198 = vector.shape_cast %197 : vector<1x2x128xf32> to vector<2x128xf32>
    %cst_88 = arith.constant dense<0.000000e+00> : vector<2x128xf32>
    %199 = tpu.matmul %194, %3, %cst_88 {dimension_numbers = #tpu.dot_dimension_numbers<[1], [0], [0], [1], [0, 0, 1, 1], [], []>} : vector<2x32xf32>, vector<32x128xf32>, vector<2x128xf32> -> vector<2x128xf32>
    %200 = arith.addf %198, %199 : vector<2x128xf32>
    %201 = vector.extract_strided_slice %200 {offsets = [0, 0], sizes = [2, 32], strides = [1, 1]} : vector<2x128xf32> to vector<2x32xf32>
    %202 = arith.negf %201 : vector<2x32xf32>
    %203 = math.exp %202 : vector<2x32xf32>
    %cst_89 = arith.constant 1.000000e+00 : f32
    %204 = vector.broadcast %cst_89 : f32 to vector<2x32xf32>
    %205 = arith.addf %204, %203 : vector<2x32xf32>
    %206 = arith.divf %204, %205 : vector<2x32xf32>
    %207 = vector.extract_strided_slice %200 {offsets = [0, 32], sizes = [2, 32], strides = [1, 1]} : vector<2x128xf32> to vector<2x32xf32>
    %208 = arith.negf %207 : vector<2x32xf32>
    %209 = math.exp %208 : vector<2x32xf32>
    %cst_90 = arith.constant 1.000000e+00 : f32
    %210 = vector.broadcast %cst_90 : f32 to vector<2x32xf32>
    %211 = arith.addf %210, %209 : vector<2x32xf32>
    %212 = arith.divf %210, %211 : vector<2x32xf32>
    %213 = vector.extract_strided_slice %200 {offsets = [0, 64], sizes = [2, 32], strides = [1, 1]} : vector<2x128xf32> to vector<2x32xf32>
    %214 = math.tanh %213 : vector<2x32xf32>
    %215 = vector.extract_strided_slice %200 {offsets = [0, 96], sizes = [2, 32], strides = [1, 1]} : vector<2x128xf32> to vector<2x32xf32>
    %216 = arith.negf %215 : vector<2x32xf32>
    %217 = math.exp %216 : vector<2x32xf32>
    %cst_91 = arith.constant 1.000000e+00 : f32
    %218 = vector.broadcast %cst_91 : f32 to vector<2x32xf32>
    %219 = arith.addf %218, %217 : vector<2x32xf32>
    %220 = arith.divf %218, %219 : vector<2x32xf32>
    %221 = arith.mulf %212, %195 : vector<2x32xf32>
    %222 = arith.mulf %206, %214 : vector<2x32xf32>
    %223 = arith.addf %221, %222 : vector<2x32xf32>
    %224 = math.tanh %223 : vector<2x32xf32>
    %225 = arith.mulf %220, %224 : vector<2x32xf32>
    %c0_92 = arith.constant 0 : index
    %c0_93 = arith.constant 0 : index
    %226 = vector.load %arg8[%c0_92, %c0_93] : memref<2x32xf32, #tpu.memory_space<vmem>>, vector<2x32xf32>
    tpu.vector_store %arg8[%c0_92, %c0_93], %225 {strides = array<i32>} : memref<2x32xf32, #tpu.memory_space<vmem>>, vector<2x32xf32>,
    %c0_94 = arith.constant 0 : index
    %c0_95 = arith.constant 0 : index
    %227 = vector.load %arg9[%c0_94, %c0_95] : memref<2x32xf32, #tpu.memory_space<vmem>>, vector<2x32xf32>
    tpu.vector_store %arg9[%c0_94, %c0_95], %223 {strides = array<i32>} : memref<2x32xf32, #tpu.memory_space<vmem>>, vector<2x32xf32>,
    %228 = arith.index_cast %c5_i32 : i32 to index
    %c0_96 = arith.constant 0 : index
    %c0_97 = arith.constant 0 : index
    %229 = vector.load %arg5[%228, %c0_96, %c0_97] : memref<8x2x32xf32, #tpu.memory_space<vmem>>, vector<1x2x32xf32>
    %230 = vector.shape_cast %229 : vector<1x2x32xf32> to vector<2x32xf32>
    %231 = vector.shape_cast %225 : vector<2x32xf32> to vector<1x2x32xf32>
    tpu.vector_store %arg5[%228, %c0_96, %c0_97], %231 {strides = array<i32>} : memref<8x2x32xf32, #tpu.memory_space<vmem>>, vector<1x2x32xf32>,
    %c6_i32 = arith.constant 6 : i32
    %c0_98 = arith.constant 0 : index
    %c0_99 = arith.constant 0 : index
    %232 = vector.load %arg8[%c0_98, %c0_99] : memref<2x32xf32, #tpu.memory_space<vmem>>, vector<2x32xf32>
    %c0_100 = arith.constant 0 : index
    %c0_101 = arith.constant 0 : index
    %233 = vector.load %arg9[%c0_100, %c0_101] : memref<2x32xf32, #tpu.memory_space<vmem>>, vector<2x32xf32>
    %234 = arith.index_cast %c6_i32 : i32 to index
    %c0_102 = arith.constant 0 : index
    %c0_103 = arith.constant 0 : index
    %235 = vector.load %arg1[%234, %c0_102, %c0_103] : memref<8x2x128xf32, #tpu.memory_space<vmem>>, vector<1x2x128xf32>
    %236 = vector.shape_cast %235 : vector<1x2x128xf32> to vector<2x128xf32>
    %cst_104 = arith.constant dense<0.000000e+00> : vector<2x128xf32>
    %237 = tpu.matmul %232, %3, %cst_104 {dimension_numbers = #tpu.dot_dimension_numbers<[1], [0], [0], [1], [0, 0, 1, 1], [], []>} : vector<2x32xf32>, vector<32x128xf32>, vector<2x128xf32> -> vector<2x128xf32>
    %238 = arith.addf %236, %237 : vector<2x128xf32>
    %239 = vector.extract_strided_slice %238 {offsets = [0, 0], sizes = [2, 32], strides = [1, 1]} : vector<2x128xf32> to vector<2x32xf32>
    %240 = arith.negf %239 : vector<2x32xf32>
    %241 = math.exp %240 : vector<2x32xf32>
    %cst_105 = arith.constant 1.000000e+00 : f32
    %242 = vector.broadcast %cst_105 : f32 to vector<2x32xf32>
    %243 = arith.addf %242, %241 : vector<2x32xf32>
    %244 = arith.divf %242, %243 : vector<2x32xf32>
    %245 = vector.extract_strided_slice %238 {offsets = [0, 32], sizes = [2, 32], strides = [1, 1]} : vector<2x128xf32> to vector<2x32xf32>
    %246 = arith.negf %245 : vector<2x32xf32>
    %247 = math.exp %246 : vector<2x32xf32>
    %cst_106 = arith.constant 1.000000e+00 : f32
    %248 = vector.broadcast %cst_106 : f32 to vector<2x32xf32>
    %249 = arith.addf %248, %247 : vector<2x32xf32>
    %250 = arith.divf %248, %249 : vector<2x32xf32>
    %251 = vector.extract_strided_slice %238 {offsets = [0, 64], sizes = [2, 32], strides = [1, 1]} : vector<2x128xf32> to vector<2x32xf32>
    %252 = math.tanh %251 : vector<2x32xf32>
    %253 = vector.extract_strided_slice %238 {offsets = [0, 96], sizes = [2, 32], strides = [1, 1]} : vector<2x128xf32> to vector<2x32xf32>
    %254 = arith.negf %253 : vector<2x32xf32>
    %255 = math.exp %254 : vector<2x32xf32>
    %cst_107 = arith.constant 1.000000e+00 : f32
    %256 = vector.broadcast %cst_107 : f32 to vector<2x32xf32>
    %257 = arith.addf %256, %255 : vector<2x32xf32>
    %258 = arith.divf %256, %257 : vector<2x32xf32>
    %259 = arith.mulf %250, %233 : vector<2x32xf32>
    %260 = arith.mulf %244, %252 : vector<2x32xf32>
    %261 = arith.addf %259, %260 : vector<2x32xf32>
    %262 = math.tanh %261 : vector<2x32xf32>
    %263 = arith.mulf %258, %262 : vector<2x32xf32>
    %c0_108 = arith.constant 0 : index
    %c0_109 = arith.constant 0 : index
    %264 = vector.load %arg8[%c0_108, %c0_109] : memref<2x32xf32, #tpu.memory_space<vmem>>, vector<2x32xf32>
    tpu.vector_store %arg8[%c0_108, %c0_109], %263 {strides = array<i32>} : memref<2x32xf32, #tpu.memory_space<vmem>>, vector<2x32xf32>,
    %c0_110 = arith.constant 0 : index
    %c0_111 = arith.constant 0 : index
    %265 = vector.load %arg9[%c0_110, %c0_111] : memref<2x32xf32, #tpu.memory_space<vmem>>, vector<2x32xf32>
    tpu.vector_store %arg9[%c0_110, %c0_111], %261 {strides = array<i32>} : memref<2x32xf32, #tpu.memory_space<vmem>>, vector<2x32xf32>,
    %266 = arith.index_cast %c6_i32 : i32 to index
    %c0_112 = arith.constant 0 : index
    %c0_113 = arith.constant 0 : index
    %267 = vector.load %arg5[%266, %c0_112, %c0_113] : memref<8x2x32xf32, #tpu.memory_space<vmem>>, vector<1x2x32xf32>
    %268 = vector.shape_cast %267 : vector<1x2x32xf32> to vector<2x32xf32>
    %269 = vector.shape_cast %263 : vector<2x32xf32> to vector<1x2x32xf32>
    tpu.vector_store %arg5[%266, %c0_112, %c0_113], %269 {strides = array<i32>} : memref<8x2x32xf32, #tpu.memory_space<vmem>>, vector<1x2x32xf32>,
    %c7_i32 = arith.constant 7 : i32
    %c0_114 = arith.constant 0 : index
    %c0_115 = arith.constant 0 : index
    %270 = vector.load %arg8[%c0_114, %c0_115] : memref<2x32xf32, #tpu.memory_space<vmem>>, vector<2x32xf32>
    %c0_116 = arith.constant 0 : index
    %c0_117 = arith.constant 0 : index
    %271 = vector.load %arg9[%c0_116, %c0_117] : memref<2x32xf32, #tpu.memory_space<vmem>>, vector<2x32xf32>
    %272 = arith.index_cast %c7_i32 : i32 to index
    %c0_118 = arith.constant 0 : index
    %c0_119 = arith.constant 0 : index
    %273 = vector.load %arg1[%272, %c0_118, %c0_119] : memref<8x2x128xf32, #tpu.memory_space<vmem>>, vector<1x2x128xf32>
    %274 = vector.shape_cast %273 : vector<1x2x128xf32> to vector<2x128xf32>
    %cst_120 = arith.constant dense<0.000000e+00> : vector<2x128xf32>
    %275 = tpu.matmul %270, %3, %cst_120 {dimension_numbers = #tpu.dot_dimension_numbers<[1], [0], [0], [1], [0, 0, 1, 1], [], []>} : vector<2x32xf32>, vector<32x128xf32>, vector<2x128xf32> -> vector<2x128xf32>
    %276 = arith.addf %274, %275 : vector<2x128xf32>
    %277 = vector.extract_strided_slice %276 {offsets = [0, 0], sizes = [2, 32], strides = [1, 1]} : vector<2x128xf32> to vector<2x32xf32>
    %278 = arith.negf %277 : vector<2x32xf32>
    %279 = math.exp %278 : vector<2x32xf32>
    %cst_121 = arith.constant 1.000000e+00 : f32
    %280 = vector.broadcast %cst_121 : f32 to vector<2x32xf32>
    %281 = arith.addf %280, %279 : vector<2x32xf32>
    %282 = arith.divf %280, %281 : vector<2x32xf32>
    %283 = vector.extract_strided_slice %276 {offsets = [0, 32], sizes = [2, 32], strides = [1, 1]} : vector<2x128xf32> to vector<2x32xf32>
    %284 = arith.negf %283 : vector<2x32xf32>
    %285 = math.exp %284 : vector<2x32xf32>
    %cst_122 = arith.constant 1.000000e+00 : f32
    %286 = vector.broadcast %cst_122 : f32 to vector<2x32xf32>
    %287 = arith.addf %286, %285 : vector<2x32xf32>
    %288 = arith.divf %286, %287 : vector<2x32xf32>
    %289 = vector.extract_strided_slice %276 {offsets = [0, 64], sizes = [2, 32], strides = [1, 1]} : vector<2x128xf32> to vector<2x32xf32>
    %290 = math.tanh %289 : vector<2x32xf32>
    %291 = vector.extract_strided_slice %276 {offsets = [0, 96], sizes = [2, 32], strides = [1, 1]} : vector<2x128xf32> to vector<2x32xf32>
    %292 = arith.negf %291 : vector<2x32xf32>
    %293 = math.exp %292 : vector<2x32xf32>
    %cst_123 = arith.constant 1.000000e+00 : f32
    %294 = vector.broadcast %cst_123 : f32 to vector<2x32xf32>
    %295 = arith.addf %294, %293 : vector<2x32xf32>
    %296 = arith.divf %294, %295 : vector<2x32xf32>
    %297 = arith.mulf %288, %271 : vector<2x32xf32>
    %298 = arith.mulf %282, %290 : vector<2x32xf32>
    %299 = arith.addf %297, %298 : vector<2x32xf32>
    %300 = math.tanh %299 : vector<2x32xf32>
    %301 = arith.mulf %296, %300 : vector<2x32xf32>
    %c0_124 = arith.constant 0 : index
    %c0_125 = arith.constant 0 : index
    %302 = vector.load %arg8[%c0_124, %c0_125] : memref<2x32xf32, #tpu.memory_space<vmem>>, vector<2x32xf32>
    tpu.vector_store %arg8[%c0_124, %c0_125], %301 {strides = array<i32>} : memref<2x32xf32, #tpu.memory_space<vmem>>, vector<2x32xf32>,
    %c0_126 = arith.constant 0 : index
    %c0_127 = arith.constant 0 : index
    %303 = vector.load %arg9[%c0_126, %c0_127] : memref<2x32xf32, #tpu.memory_space<vmem>>, vector<2x32xf32>
    tpu.vector_store %arg9[%c0_126, %c0_127], %299 {strides = array<i32>} : memref<2x32xf32, #tpu.memory_space<vmem>>, vector<2x32xf32>,
    %304 = arith.index_cast %c7_i32 : i32 to index
    %c0_128 = arith.constant 0 : index
    %c0_129 = arith.constant 0 : index
    %305 = vector.load %arg5[%304, %c0_128, %c0_129] : memref<8x2x32xf32, #tpu.memory_space<vmem>>, vector<1x2x32xf32>
    %306 = vector.shape_cast %305 : vector<1x2x32xf32> to vector<2x32xf32>
    %307 = vector.shape_cast %301 : vector<2x32xf32> to vector<1x2x32xf32>
    tpu.vector_store %arg5[%304, %c0_128, %c0_129], %307 {strides = array<i32>} : memref<8x2x32xf32, #tpu.memory_space<vmem>>, vector<1x2x32xf32>,
    %c8_i32 = arith.constant 8 : i32
    %c0_i32_130 = arith.constant 0 : i32
    %308 = arith.cmpi eq, %arg0, %c0_i32_130 : i32
    %309 = arith.extui %308 : i1 to i32
    %c0_i32_131 = arith.constant 0 : i32
    %310 = arith.cmpi ne, %309, %c0_i32_131 : i32
    scf.if %310 {
      %c0_132 = arith.constant 0 : index
      %c0_133 = arith.constant 0 : index
      %311 = vector.load %arg8[%c0_132, %c0_133] : memref<2x32xf32, #tpu.memory_space<vmem>>, vector<2x32xf32>
      %c0_134 = arith.constant 0 : index
      %c0_135 = arith.constant 0 : index
      %312 = vector.load %arg6[%c0_134, %c0_135] : memref<2x32xf32, #tpu.memory_space<vmem>>, vector<2x32xf32>
      tpu.vector_store %arg6[%c0_134, %c0_135], %311 {strides = array<i32>} : memref<2x32xf32, #tpu.memory_space<vmem>>, vector<2x32xf32>,
      %c0_136 = arith.constant 0 : index
      %c0_137 = arith.constant 0 : index
      %313 = vector.load %arg9[%c0_136, %c0_137] : memref<2x32xf32, #tpu.memory_space<vmem>>, vector<2x32xf32>
      %c0_138 = arith.constant 0 : index
      %c0_139 = arith.constant 0 : index
      %314 = vector.load %arg7[%c0_138, %c0_139] : memref<2x32xf32, #tpu.memory_space<vmem>>, vector<2x32xf32>
      tpu.vector_store %arg7[%c0_138, %c0_139], %313 {strides = array<i32>} : memref<2x32xf32, #tpu.memory_space<vmem>>, vector<2x32xf32>,
    } else {
    }
    return
  }
  func.func @transform_0(%arg0: i32) -> (i32, i32, i32) {
    %c0_i32 = arith.constant 0 : i32
    %c0_i32_0 = arith.constant 0 : i32
    %c0_i32_1 = arith.constant 0 : i32
    return %arg0, %c0_i32, %c0_i32_0 : i32, i32, i32
  }
  func.func @transform_1(%arg0: i32) -> (i32, i32) {
    %c0_i32 = arith.constant 0 : i32
    %c0_i32_0 = arith.constant 0 : i32
    %c0_i32_1 = arith.constant 0 : i32
    return %c0_i32, %c0_i32_0 : i32, i32
  }
  func.func @transform_2(%arg0: i32) -> (i32, i32) {
    %c0_i32 = arith.constant 0 : i32
    %c0_i32_0 = arith.constant 0 : i32
    %c0_i32_1 = arith.constant 0 : i32
    return %c0_i32, %c0_i32_0 : i32, i32
  }
  func.func @transform_3(%arg0: i32) -> (i32, i32) {
    %c0_i32 = arith.constant 0 : i32
    %c0_i32_0 = arith.constant 0 : i32
    %c0_i32_1 = arith.constant 0 : i32
    return %c0_i32, %c0_i32_0 : i32, i32
  }
  func.func @transform_4(%arg0: i32) -> (i32, i32, i32) {
    %c0_i32 = arith.constant 0 : i32
    %c0_i32_0 = arith.constant 0 : i32
    %c0_i32_1 = arith.constant 0 : i32
    return %arg0, %c0_i32, %c0_i32_0 : i32, i32, i32
  }
  func.func @transform_5(%arg0: i32) -> (i32, i32) {
    %c0_i32 = arith.constant 0 : i32
    %c0_i32_0 = arith.constant 0 : i32
    %c0_i32_1 = arith.constant 0 : i32
    return %c0_i32, %c0_i32_0 : i32, i32
  }
  func.func @transform_6(%arg0: i32) -> (i32, i32) {
    %c0_i32 = arith.constant 0 : i32
    %c0_i32_0 = arith.constant 0 : i32
    %c0_i32_1 = arith.constant 0 : i32
    return %c0_i32, %c0_i32_0 : i32, i32
  }
}

module attributes {stable_mosaic.version = 11 : i64} {
  func.func @head_kernel(%arg0: i32, %arg1: memref<8x2x32xf32, #tpu.memory_space<vmem>>, %arg2: memref<1x32xf32, #tpu.memory_space<vmem>>, %arg3: memref<1xf32, #tpu.memory_space<smem>>, %arg4: memref<8x2xf32, #tpu.memory_space<vmem>>) attributes {dimension_semantics = [#tpu.dimension_semantics<parallel>], iteration_bounds = array<i64: 1>, scalar_prefetch = 0 : i64, scratch_operands = 0 : i64, tpu.core_type = #tpu.core_type<tc>, window_params = [{transform_indices = @transform_0, window_bounds = array<i64: 8, 2, 32>}, {pipeline_mode = #tpu.pipeline_mode<synchronous>, transform_indices = @transform_1, window_bounds = array<i64: 1, 32>}, {transform_indices = @transform_2, window_bounds = array<i64: 1>}, {transform_indices = @transform_3, window_bounds = array<i64: 8, 2>}]} {
    %c0 = arith.constant 0 : index
    %c0_0 = arith.constant 0 : index
    %c0_1 = arith.constant 0 : index
    %0 = vector.load %arg1[%c0, %c0_0, %c0_1] : memref<8x2x32xf32, #tpu.memory_space<vmem>>, vector<8x2x32xf32>
    %1 = math.tanh %0 : vector<8x2x32xf32>
    %c0_2 = arith.constant 0 : index
    %c0_3 = arith.constant 0 : index
    %2 = vector.load %arg2[%c0_2, %c0_3] : memref<1x32xf32, #tpu.memory_space<vmem>>, vector<1x32xf32>
    %3 = vector.shape_cast %2 : vector<1x32xf32> to vector<32xf32>
    %4 = vector.shape_cast %3 : vector<32xf32> to vector<1x1x32xf32>
    %5 = vector.broadcast %4 : vector<1x1x32xf32> to vector<8x2x32xf32>
    %6 = arith.mulf %1, %5 : vector<8x2x32xf32>
    %cst = arith.constant dense<0.000000e+00> : vector<8x2xf32>
    %7 = vector.multi_reduction <add>, %6, %cst [2] : vector<8x2x32xf32> to vector<8x2xf32>
    %c0_4 = arith.constant 0 : index
    %8 = memref.load %arg3[%c0_4] : memref<1xf32, #tpu.memory_space<smem>>
    %9 = vector.broadcast %8 : f32 to vector<8x2xf32>
    %10 = arith.addf %7, %9 : vector<8x2xf32>
    %11 = arith.negf %10 : vector<8x2xf32>
    %12 = math.exp %11 : vector<8x2xf32>
    %cst_5 = arith.constant 1.000000e+00 : f32
    %13 = vector.broadcast %cst_5 : f32 to vector<8x2xf32>
    %14 = arith.addf %13, %12 : vector<8x2xf32>
    %15 = arith.divf %13, %14 : vector<8x2xf32>
    %c0_6 = arith.constant 0 : index
    %c0_7 = arith.constant 0 : index
    %16 = vector.load %arg4[%c0_6, %c0_7] : memref<8x2xf32, #tpu.memory_space<vmem>>, vector<8x2xf32>
    tpu.vector_store %arg4[%c0_6, %c0_7], %15 {strides = array<i32>} : memref<8x2xf32, #tpu.memory_space<vmem>>, vector<8x2xf32>,
    return
  }
  func.func @transform_0(%arg0: i32) -> (i32, i32, i32) {
    %c0_i32 = arith.constant 0 : i32
    %c0_i32_0 = arith.constant 0 : i32
    %c0_i32_1 = arith.constant 0 : i32
    return %arg0, %c0_i32, %c0_i32_0 : i32, i32, i32
  }
  func.func @transform_1(%arg0: i32) -> (i32, i32) {
    %c0_i32 = arith.constant 0 : i32
    %c0_i32_0 = arith.constant 0 : i32
    %c0_i32_1 = arith.constant 0 : i32
    return %c0_i32, %c0_i32_0 : i32, i32
  }
  func.func @transform_2(%arg0: i32) -> i32 {
    %c0_i32 = arith.constant 0 : i32
    %c0_i32_0 = arith.constant 0 : i32
    return %c0_i32 : i32
  }
  func.func @transform_3(%arg0: i32) -> (i32, i32) {
    %c0_i32 = arith.constant 0 : i32
    %c0_i32_0 = arith.constant 0 : i32
    return %arg0, %c0_i32 : i32, i32
  }
}

</mosaic_0001>

<bundles_post_ra>
// kernel: lstm_model_forward.7
= control target key start
LH: loop header
LB: loop body
LE: loop exit
PB: predicated region body
PF: predicated region fallthrough
CT: control target
= control target key end

     0   :  { %v46_v0 = vlaneseq  ;;  %v244_v4 = vmov 1983009808   ;;  %vm75_vm0 = vcmask 261120   ;;  %s328_s1 = inlined_call_operand.vmem [shape: f32[32,128], index: 1, kind: input, shape index: {}]   ;;  %s329_s0 = inlined_call_operand.vmem [shape: f32[8,2,32], index: 0, kind: input, shape index: {}]   ;;  %s330_s2 = inlined_call_operand.vmem [shape: f32[1,128], index: 2, kind: input, shape index: {}]   ;;  %s331_s3 = inlined_call_operand.vmem [shape: f32[8,2,128], index: 3, kind: output, shape index: {}]  }
   0x1   :  { %v22_v1 = vld [vmem:[%s328_s1] sm:$0xff]  ;;  %v23_v2 = vld [vmem:[%s328_s1 + $0x8] sm:$0xff]  ;;  %v24_v3 = vld [vmem:[%s328_s1 + $0x10] sm:$0xff]  ;;  %v44_v5 = vunpack.c.l.s4 %v244_v4 }
   0x2   :  { %v235_v6 = vpack.c.bf16 %v23_v2, %v22_v1  ;;  %v25_v7 = vld [vmem:[%s328_s1 + $0x18] sm:$0xff]  ;;  %v14_v8 = vld [vmem:[%s329_s0] sm:$0x3]  ;;  %v15_v9 = vld [vmem:[%s329_s0 + $0x2] sm:$0x3]  ;;  %v47_v10 = vshrl.u32 %v46_v0, 7 }
   0x3   :  { %v239_v11 = vpack.c.bf16 %v25_v7, %v24_v3  ;;  %v16_v12 = vld [vmem:[%s329_s0 + $0x4] sm:$0x3]  ;;  %v17_v13 = vld [vmem:[%s329_s0 + $0x6] sm:$0x3]  ;;  %v41_v14 = vcombine.low %v14_v8, %v15_v9  ;;  %v45_v15 = vunpack.c.0.s8 %v44_v5  ;;  %v18_v16 = vld [vmem:[%s329_s0 + $0x8] sm:$0x3] }
   0x4   :  { %236 = vmatprep.subr.bf16.mxu0 %v235_v6  ;;  %v42_v17 = vcombine.low %v16_v12, %v17_v13  ;;  %v19_v18 = vld [vmem:[%s329_s0 + $0xa] sm:$0x3]  ;;  %v20_v19 = vld [vmem:[%s329_s0 + $0xc] sm:$0x3]  ;;  %v21_v20 = vld [vmem:[%s329_s0 + $0xe] sm:$0x3] }
   0x5   :  { %238 = vmatpush3.bf16.msra.mxu0 %v235_v6  ;;  %v48_v21 = vsub.s32 %v45_v15, %v47_v10  ;;  %v58_v22 = vcombine.low %v18_v16, %v19_v18  ;;  %v59_v23 = vcombine.low %v20_v19, %v21_v20  ;;  %v211_v30 = vld [vmem:[%s330_s2] ss:$0 sm:$0xff] }
   0x6   :  { %240 = vmatprep.subr.bf16.mxu0 %v239_v11 }
   0x7   :  { %v49_v24 = vrot.slane %v41_v14, %v48_v21  ;;  %v56_v25 = vrot.slane %v42_v17, %v48_v21  ;;  %v66_v26 = vrot.slane %v58_v22, %v48_v21  ;;  %v73_v27 = vrot.slane %v59_v23, %v48_v21 }
   0x9   :  { %242 = vmatpush3.bf16.msra.mxu0 %v239_v11  ;;  %v57_v28 = vcombine.low %v49_v24, %v56_v25  ;;  %v74_v29 = vcombine.low %v66_v26, %v73_v27 }
   0xb   :  { %232 = vmatprep.mubr.msk.f32.mxu0 %vm75_vm0, %v57_v28 }
   0xc   :  { %233 = vmatmul.mubr.msk.f32.vlgmr.msra.gmra.mrb[0].mxu0 %vm75_vm0, %v74_v29 }
  0xdf   :  { %v234_v31 = vpop.f32.mrb[0].mxu0 }
  0xe0   :  { %v152_v32 = vadd.f32 %v234_v31, %v211_v30  ;;  %v146_v33 = vpop.f32.mrb[1].mxu0 }
  0xe1   :  { %v147_v34 = vadd.f32 %v211_v30, %v146_v33 }
  0xe2   :  { %v174_v35 = vcombine.high %v152_v32, %v152_v32  ;;  %v181_v36 = vrot.slane %v152_v32, %v48_v21  ;;  %216 = vst.sshfl [vmem:[%s331_s3 + $0x8] sm:$0x3 pattern:$0x76325410] %v152_v32 }
  0xe3   :  { %v157_v37 = vcombine.high %v147_v34, %v147_v34  ;;  %v164_v38 = vrot.slane %v147_v34, %v48_v21  ;;  %214 = vst.sshfl [vmem:[%s331_s3] sm:$0x3 pattern:$0x76325410] %v147_v34 }
  0xe4   :  { %v188_v39 = vrot.slane %v174_v35, %v48_v21  ;;  %v189_v40 = vcombine.high %v181_v36, %v181_v36  ;;  %217 = vst.sshfl [vmem:[%s331_s3 + $0xc] sm:$0x3 pattern:$0x76325410] %v174_v35 }
  0xe5   :  { %v171_v41 = vrot.slane %v157_v37, %v48_v21  ;;  %v172_v42 = vcombine.high %v164_v38, %v164_v38  ;;  %215 = vst.sshfl [vmem:[%s331_s3 + $0x4] sm:$0x3 pattern:$0x76325410] %v157_v37 }
  0xe6   :  { %v190_v43 = vcombine.high %v188_v39, %v188_v39  ;;  %204 = vst [vmem:[%s331_s3 + $0xa] sm:$0x3] %v189_v40 }
  0xe7   :  { %v173_v44 = vcombine.high %v171_v41, %v171_v41  ;;  %200 = vst [vmem:[%s331_s3 + $0x2] sm:$0x3] %v172_v42 }
  0xe8   :  { %206 = vst [vmem:[%s331_s3 + $0xe] sm:$0x3] %v190_v43 }
  0xe9   :  { %202 = vst [vmem:[%s331_s3 + $0x6] sm:$0x3] %v173_v44 }

// kernel: lstm_model_forward.5
= control target key start
LH: loop header
LB: loop body
LE: loop exit
PB: predicated region body
PF: predicated region fallthrough
CT: control target
= control target key end

     0   :  { %v44_v0 = vlaneseq  ;;  %v232_v4 = vmov 1983009808   ;;  %vm73_vm0 = vcmask 130048   ;;  %s310_s1 = inlined_call_operand.vmem [shape: f32[16,128], index: 1, kind: input, shape index: {}]   ;;  %s311_s0 = inlined_call_operand.vmem [shape: f32[8,2,16], index: 0, kind: input, shape index: {}]   ;;  %s312_s2 = inlined_call_operand.vmem [shape: f32[1,128], index: 2, kind: input, shape index: {}]   ;;  %s313_s3 = inlined_call_operand.vmem [shape: f32[8,2,128], index: 3, kind: output, shape index: {}]  }
   0x1   :  { %v22_v1 = vld [vmem:[%s310_s1] sm:$0xff]  ;;  %v23_v2 = vld [vmem:[%s310_s1 + $0x8] sm:$0xff]  ;;  %v42_v5 = vunpack.c.l.s4 %v232_v4 }
   0x2   :  { %v14_v3 = vld [vmem:[%s311_s0] sm:$0x3]  ;;  %v227_v6 = vpack.c.bf16 %v23_v2, %v22_v1  ;;  %v15_v7 = vld [vmem:[%s311_s0 + $0x2] sm:$0x3]  ;;  %v16_v8 = vld [vmem:[%s311_s0 + $0x4] sm:$0x3] }
   0x3   :  { %v17_v9 = vld [vmem:[%s311_s0 + $0x6] sm:$0x3]  ;;  %v39_v10 = vcombine.low %v14_v3, %v15_v7  ;;  %v43_v12 = vunpack.c.0.s8 %v42_v5  ;;  %v45_v13 = vshrl.u32 %v44_v0, 7  ;;  %v18_v14 = vld [vmem:[%s311_s0 + $0x8] sm:$0x3] }
   0x4   :  { %v40_v11 = vcombine.low %v16_v8, %v17_v9  ;;  %v19_v15 = vld [vmem:[%s311_s0 + $0xa] sm:$0x3]  ;;  %228 = vmatprep.subr.bf16.mxu0 %v227_v6  ;;  %v20_v16 = vld [vmem:[%s311_s0 + $0xc] sm:$0x3]  ;;  %v21_v17 = vld [vmem:[%s311_s0 + $0xe] sm:$0x3] }
   0x5   :  { %v56_v18 = vcombine.low %v18_v14, %v19_v15  ;;  %230 = vmatpush3.bf16.msra.mxu0 %v227_v6  ;;  %v46_v19 = vsub.s32 %v43_v12, %v45_v13  ;;  %v57_v20 = vcombine.low %v20_v16, %v21_v17  ;;  %v209_v27 = vld [vmem:[%s312_s2] ss:$0 sm:$0xff] }
   0x7   :  { %v47_v21 = vrot.slane %v39_v10, %v46_v19  ;;  %v54_v22 = vrot.slane %v40_v11, %v46_v19  ;;  %v64_v23 = vrot.slane %v56_v18, %v46_v19  ;;  %v71_v24 = vrot.slane %v57_v20, %v46_v19 }
   0x9   :  { %v55_v25 = vcombine.low %v47_v21, %v54_v22  ;;  %v72_v26 = vcombine.low %v64_v23, %v71_v24 }
   0xb   :  { %224 = vmatprep.mubr.msk.f32.mxu0 %vm73_vm0, %v55_v25 }
   0xc   :  { %225 = vmatmul.mubr.msk.f32.vlgmr.msra.gmra.mrb[0].mxu0 %vm73_vm0, %v72_v26 }
  0xdf   :  { %v226_v28 = vpop.f32.mrb[0].mxu0 }
  0xe0   :  { %v150_v29 = vadd.f32 %v226_v28, %v209_v27  ;;  %v144_v30 = vpop.f32.mrb[1].mxu0 }
  0xe1   :  { %v145_v31 = vadd.f32 %v209_v27, %v144_v30 }
  0xe2   :  { %v172_v32 = vcombine.high %v150_v29, %v150_v29  ;;  %v179_v33 = vrot.slane %v150_v29, %v46_v19  ;;  %214 = vst.sshfl [vmem:[%s313_s3 + $0x8] sm:$0x3 pattern:$0x76325410] %v150_v29 }
  0xe3   :  { %v155_v34 = vcombine.high %v145_v31, %v145_v31  ;;  %v162_v35 = vrot.slane %v145_v31, %v46_v19  ;;  %212 = vst.sshfl [vmem:[%s313_s3] sm:$0x3 pattern:$0x76325410] %v145_v31 }
  0xe4   :  { %v186_v36 = vrot.slane %v172_v32, %v46_v19  ;;  %v187_v37 = vcombine.high %v179_v33, %v179_v33  ;;  %215 = vst.sshfl [vmem:[%s313_s3 + $0xc] sm:$0x3 pattern:$0x76325410] %v172_v32 }
  0xe5   :  { %v169_v38 = vrot.slane %v155_v34, %v46_v19  ;;  %v170_v39 = vcombine.high %v162_v35, %v162_v35  ;;  %213 = vst.sshfl [vmem:[%s313_s3 + $0x4] sm:$0x3 pattern:$0x76325410] %v155_v34 }
  0xe6   :  { %v188_v40 = vcombine.high %v186_v36, %v186_v36  ;;  %202 = vst [vmem:[%s313_s3 + $0xa] sm:$0x3] %v187_v37 }
  0xe7   :  { %v171_v41 = vcombine.high %v169_v38, %v169_v38  ;;  %198 = vst [vmem:[%s313_s3 + $0x2] sm:$0x3] %v170_v39 }
  0xe8   :  { %204 = vst [vmem:[%s313_s3 + $0xe] sm:$0x3] %v188_v40 }
  0xe9   :  { %200 = vst [vmem:[%s313_s3 + $0x6] sm:$0x3] %v171_v41 }

// kernel: lstm_model_forward.9
= control target key start
LH: loop header
LB: loop body
LE: loop exit
PB: predicated region body
PF: predicated region fallthrough
CT: control target
= control target key end

     0   :  { %vm46_vm0 = vcmask 254976   ;;  %vm171_vm1 = vcmask 1041409   ;;  %vm173_vm2 = vcmask 1042434   ;;  %vm175_vm3 = vcmask 1043459   ;;  %s310_s0 = inlined_call_operand.vmem [shape: f32[8,2,32], index: 0, kind: input, shape index: {}]   ;;  %s311_s1 = inlined_call_operand.vmem [shape: f32[1,32], index: 1, kind: input, shape index: {}]   ;;  %s312_s2 = inlined_call_operand.<no memory space> [shape: f32[1], index: 2, kind: input, shape index: {}]   ;;  %s313_s3 = inlined_call_operand.vmem [shape: f32[8,2], index: 3, kind: output, shape index: {}]  }
   0x1   :  { %v15_v0 = vld [vmem:[%s310_s0] sm:$0x3]  ;;  %v17_v1 = vld [vmem:[%s310_s0 + $0x4] sm:$0x3]  ;;  %v16_v2 = vld [vmem:[%s310_s0 + $0x2] sm:$0x3]  ;;  %v72_v33 = vstv %s312_s2 }
   0x2   :  { %201 = vtanh.f32 %v15_v0  ;;  %v18_v3 = vld [vmem:[%s310_s0 + $0x6] sm:$0x3]  ;;  %v19_v4 = vld [vmem:[%s310_s0 + $0x8] sm:$0x3]  ;;  %v20_v5 = vld [vmem:[%s310_s0 + $0xa] sm:$0x3] }
   0x3   :  { %203 = vtanh.f32 %v17_v1  ;;  %v21_v6 = vld [vmem:[%s310_s0 + $0xc] sm:$0x3]  ;;  %v22_v7 = vld [vmem:[%s310_s0 + $0xe] sm:$0x3]  ;;  %v192_v8 = vld [vmem:[%s311_s1] ss:$0 sm:$0xff]  ;;  %v137_v1 = vlaneseq }
   0x4   :  { %205 = vtanh.f32 %v16_v2  ;;  %vm177_vm4 = vcmask 1044484   ;;  %vm179_vm5 = vcmask 1045509   ;;  %vm181_vm6 = vcmask 1046534  }
   0x5   :  { %207 = vtanh.f32 %v18_v3  ;;  %vm183_vm7 = vcmask 1047559   ;;  %vm186_vm8 = vcmask 15360  }
   0x6   :  { %209 = vtanh.f32 %v19_v4 }
   0x7   :  { %211 = vtanh.f32 %v20_v5 }
   0x8   :  { %213 = vtanh.f32 %v21_v6  ;;  %v138_v6 = vand.u32 127, %v137_v1 }
   0x9   :  { %215 = vtanh.f32 %v22_v7  ;;  %v140_v7 = vshrl.u32 %v137_v1, 7 }
   0xc   :  { %v202_v9 = vpop.eup %201 }
   0xd   :  { %v204_v10 = vpop.eup %203  ;;  %v38_v11 = vmul.f32 %v202_v9, %v192_v8 }
   0xe   :  { %v206_v12 = vpop.eup %205  ;;  %v40_v13 = vmul.f32 %v204_v10, %v192_v8 }
   0xf   :  { %v208_v14 = vpop.eup %207  ;;  %v47_v15 = vsel %vm46_vm0, %v38_v11, 0.0  ;;  %v39_v16 = vmul.f32 %v206_v12, %v192_v8  ;;  %v141_v12 = vsub.s32 %v138_v6, %v140_v7 }
  0x10   :  { %v210_v17 = vpop.eup %209  ;;  %48 = vadd.xlane.f32.xlu0 %v47_v15  ;;  %v53_v18 = vsel %vm46_vm0, %v40_v13, 0.0  ;;  %v41_v19 = vmul.f32 %v208_v14, %v192_v8 }
  0x11   :  { %v212_v20 = vpop.eup %211  ;;  %54 = vadd.xlane.f32.xlu1 %v53_v18  ;;  %v50_v21 = vsel %vm46_vm0, %v39_v16, 0.0  ;;  %v42_v22 = vmul.f32 %v210_v17, %v192_v8 }
  0x12   :  { %v214_v23 = vpop.eup %213  ;;  %v56_v24 = vsel %vm46_vm0, %v41_v19, 0.0  ;;  %v43_v25 = vmul.f32 %v212_v20, %v192_v8 }
  0x13   :  { %v216_v26 = vpop.eup %215  ;;  %v59_v27 = vsel %vm46_vm0, %v42_v22, 0.0  ;;  %v44_v28 = vmul.f32 %v214_v23, %v192_v8 }
  0x14   :  { %51 = vadd.xlane.f32.xlu0 %v50_v21  ;;  %v62_v29 = vsel %vm46_vm0, %v43_v25, 0.0  ;;  %v45_v30 = vmul.f32 %v216_v26, %v192_v8 }
  0x15   :  { %57 = vadd.xlane.f32.xlu1 %v56_v24  ;;  %v65_v31 = vsel %vm46_vm0, %v44_v28, 0.0 }
  0x16   :  { %v68_v32 = vsel %vm46_vm0, %v45_v30, 0.0 }
  0x18   :  { %60 = vadd.xlane.f32.xlu0 %v59_v27 }
  0x19   :  { %63 = vadd.xlane.f32.xlu1 %v62_v29 }
  0x1c   :  { %66 = vadd.xlane.f32.xlu0 %v65_v31 }
  0x1d   :  { %69 = vadd.xlane.f32.xlu1 %v68_v32 }
  0x9d   :  { %v49_v34 = vpop.xlane.xlu0 %48 }
  0x9e   :  { %v73_v35 = vadd.f32 %v72_v33, %v49_v34  ;;  %v55_v36 = vpop.xlane.xlu1 %54 }
  0x9f   :  { %v75_v37 = vadd.f32 %v72_v33, %v55_v36 }
  0xa0   :  { %v193_v38 = vmul.f32 -1.442695, %v73_v35 }
  0xa1   :  { %v195_v39 = vmul.f32 -1.442695, %v75_v37  ;;  %v52_v40 = vpop.xlane.xlu0 %51 }
  0xa2   :  { %217 = vpow2.f32 %v193_v38  ;;  %v74_v41 = vadd.f32 %v72_v33, %v52_v40  ;;  %v58_v42 = vpop.xlane.xlu1 %57 }
  0xa3   :  { %219 = vpow2.f32 %v195_v39  ;;  %v76_v43 = vadd.f32 %v72_v33, %v58_v42 }
  0xa4   :  { %v194_v44 = vmul.f32 -1.442695, %v74_v41 }
  0xa5   :  { %v196_v45 = vmul.f32 -1.442695, %v76_v43  ;;  %v61_v46 = vpop.xlane.xlu0 %60 }
  0xa6   :  { %221 = vpow2.f32 %v194_v44  ;;  %v77_v47 = vadd.f32 %v72_v33, %v61_v46  ;;  %v64_v48 = vpop.xlane.xlu1 %63 }
  0xa7   :  { %223 = vpow2.f32 %v196_v45  ;;  %v78_v49 = vadd.f32 %v72_v33, %v64_v48 }
  0xa8   :  { %v197_v50 = vmul.f32 -1.442695, %v77_v47 }
  0xa9   :  { %v198_v51 = vmul.f32 -1.442695, %v78_v49  ;;  %v67_v52 = vpop.xlane.xlu0 %66 }
  0xaa   :  { %225 = vpow2.f32 %v197_v50  ;;  %v79_v53 = vadd.f32 %v72_v33, %v67_v52  ;;  %v70_v54 = vpop.xlane.xlu1 %69 }
  0xab   :  { %227 = vpow2.f32 %v198_v51  ;;  %v80_v55 = vadd.f32 %v72_v33, %v70_v54 }
  0xac   :  { %v218_v56 = vpop.eup %217  ;;  %v199_v57 = vmul.f32 -1.442695, %v79_v53 }
  0xad   :  { %v220_v58 = vpop.eup %219  ;;  %v105_v59 = vadd.f32 1.0, %v218_v56  ;;  %v200_v60 = vmul.f32 -1.442695, %v80_v55 }
  0xae   :  { %v107_v61 = vadd.f32 1.0, %v220_v58  ;;  %229 = vpow2.f32 %v199_v57 }
  0xaf   :  { %231 = vrcp.f32 %v105_v59 }
  0xb0   :  { %v222_v62 = vpop.eup %221  ;;  %233 = vpow2.f32 %v200_v60 }
  0xb1   :  { %v224_v63 = vpop.eup %223  ;;  %v106_v0 = vadd.f32 1.0, %v222_v62  ;;  %235 = vrcp.f32 %v107_v61 }
  0xb2   :  { %v108_v2 = vadd.f32 1.0, %v224_v63 }
  0xb3   :  { %237 = vrcp.f32 %v106_v0 }
  0xb4   :  { %v226_v3 = vpop.eup %225  ;;  %239 = vrcp.f32 %v108_v2 }
  0xb5   :  { %v228_v4 = vpop.eup %227  ;;  %v109_v5 = vadd.f32 1.0, %v226_v3 }
  0xb6   :  { %v110_v8 = vadd.f32 1.0, %v228_v4 }
  0xb7   :  { %241 = vrcp.f32 %v109_v5 }
  0xb8   :  { %v230_v9 = vpop.eup %229  ;;  %243 = vrcp.f32 %v110_v8 }
  0xb9   :  { %v111_v10 = vadd.f32 1.0, %v230_v9  ;;  %v232_v11 = vpop.eup %231 }
  0xba   :  { %v234_v13 = vpop.eup %233  ;;  %v142_v18 = vrot.slane %v232_v11, %v141_v12 }
  0xbb   :  { %245 = vrcp.f32 %v111_v10  ;;  %v236_v14 = vpop.eup %235  ;;  %v112_v15 = vadd.f32 1.0, %v234_v13 }
  0xbc   :  { %v150_v20 = vrot.slane %v236_v14, %v141_v12 }
  0xbd   :  { %v238_v16 = vpop.eup %237  ;;  %247 = vrcp.f32 %v112_v15 }
  0xbe   :  { %v240_v17 = vpop.eup %239  ;;  %v146_v19 = vrot.slane %v238_v16, %v141_v12 }
  0xbf   :  { %v154_v21 = vrot.slane %v240_v17, %v141_v12 }
  0xc0   :  { %v172_v22 = vsel %vm171_vm1, %v146_v19, %v142_v18 }
  0xc1   :  { %v242_v23 = vpop.eup %241  ;;  %v174_v24 = vsel %vm173_vm2, %v150_v20, %v172_v22 }
  0xc2   :  { %v244_v25 = vpop.eup %243  ;;  %v176_v26 = vsel %vm175_vm3, %v154_v21, %v174_v24  ;;  %v158_v27 = vrot.slane %v242_v23, %v141_v12 }
  0xc3   :  { %v162_v28 = vrot.slane %v244_v25, %v141_v12 }
  0xc4   :  { %v178_v29 = vsel %vm177_vm4, %v158_v27, %v176_v26 }
  0xc5   :  { %v246_v30 = vpop.eup %245  ;;  %v180_v32 = vsel %vm179_vm5, %v162_v28, %v178_v29 }
  0xc6   :  { %v166_v31 = vrot.slane %v246_v30, %v141_v12 }
  0xc7   :  { %v248_v33 = vpop.eup %247 }
  0xc8   :  { %v182_v34 = vsel %vm181_vm6, %v166_v31, %v180_v32  ;;  %v170_v35 = vrot.slane %v248_v33, %v141_v12 }
  0xca   :  { %v184_v36 = vsel %vm183_vm7, %v170_v35, %v182_v34 }
  0xcb   :  { %187 = vst.msk [vmem:[%s313_s3] sm:$0xff] %vm186_vm8, %v184_v36 }

// kernel: lstm_model_forward.6
= control target key start
LH: loop header
LB: loop body
LE: loop exit
PB: predicated region body
PF: predicated region fallthrough
CT: control target
= control target key end

     0   :  { %vm25_vm0 = vcmask 254976   ;;  %v1272_v0 = vmov 0.0|0.0   ;;  %vm1273_vm1 = vmmov 0   ;;  %v1274_v4 = vmov 0.0   ;;  %s1275_s9 = smov 64   ;;  %s1276_s10 = smov 32   ;;  %s1521_s3 = inlined_call_operand.vmem [shape: f32[32,128], index: 3, kind: input, shape index: {}]   ;;  %s1522_s1 = inlined_call_operand.vmem [shape: f32[2,32], index: 1, kind: input, shape index: {}]   ;;  %s1523_s2 = inlined_call_operand.vmem [shape: f32[2,32], index: 2, kind: input, shape index: {}]   ;;  %s1524_s0 = inlined_call_operand.vmem [shape: f32[8,2,128], index: 0, kind: input, shape index: {}]   ;;  %s1525_s4 = inlined_call_operand.vmem [shape: f32[8,2,32], index: 4, kind: output, shape index: {0}]   ;;  %s1526_s6 = inlined_call_operand.vmem [shape: f32[2,32], index: 6, kind: output, shape index: {2}]   ;;  %s1527_s5 = inlined_call_operand.vmem [shape: f32[2,32], index: 5, kind: output, shape index: {1}]  }
   0x1   :  { %1154 = vmatprep.subr.bf16.mxu0 %v1272_v0  ;;  %v29_v1 = vld [vmem:[%s1521_s3] sm:$0xff]  ;;  %v30_v2 = vld [vmem:[%s1521_s3 + $0x8] sm:$0xff]  ;;  %v31_v3 = vld [vmem:[%s1521_s3 + $0x10] sm:$0xff]  ;;  %1074 = vmatprep.mubr.msk.f32.mxu0 %vm1273_vm1, %v1274_v4  ;;  %vm36_vm2 = vcmask 261120  }
   0x2   :  { %v1325_v5 = vpack.c.bf16 %v30_v2, %v29_v1  ;;  %v32_v6 = vld [vmem:[%s1521_s3 + $0x18] sm:$0xff]  ;;  %v24_v7 = vld [vmem:[%s1522_s1] sm:$0x3]  ;;  %1160 = vmatprep.subr.bf16.mxu1 %v1272_v0  ;;  %1085 = vmatprep.mubr.msk.f32.mxu1 %vm1273_vm1, %v1274_v4  ;;  %v998_v34 = vld [vmem:[%s1524_s0 + $0x2] sm:$0x3] }
   0x3   :  { %26 = vst.msk [vmem:[#allocation2] sm:$0x3] %vm25_vm0, %v24_v7  ;;  %v1338_v8 = vpack.c.bf16 %v32_v6, %v31_v3  ;;  %v27_v10 = vld [vmem:[%s1523_s2] sm:$0x3]  ;;  %s1277_s2 = smov 96  }
   0x4   :  { %1156 = vmatpush3.bf16.msra.mxu0 %v1325_v5  ;;  %1162 = vmatpush3.bf16.msra.mxu1 %v1325_v5  ;;  %28 = vst.msk [vmem:[#allocation3] sm:$0x3] %vm25_vm0, %v27_v10  ;;  %v35_v11 = vld [vmem:[%s1524_s0] sm:$0x3]  ;;  %v1002_v56 = vld [vmem:[%s1524_s0 + $0x4] sm:$0x3] }
   0x5   :  { %1157 = vmatprep.subr.bf16.mxu0 %v1272_v0  ;;  %1163 = vmatprep.subr.bf16.mxu1 %v1272_v0 }
   0x8   :  { %1159 = vmatpush3.bf16.msra.mxu0 %v1338_v8  ;;  %1165 = vmatpush3.bf16.msra.mxu1 %v1338_v8 }
   0x9   :  { %1166 = vmatprep.subr.bf16.mxu0 %v1272_v0  ;;  %1172 = vmatprep.subr.bf16.mxu1 %v1272_v0 }
   0xa   :  { %v33_v9 = vld [vmem:[#allocation2] sm:$0x3] }
   0xb   :  { %1075 = vmatmul.mubr.msk.f32.vlgmr.msra.gmra.mrb[0].mxu0 %vm36_vm2, %v33_v9  ;;  %v34_v16 = vld [vmem:[#allocation3] sm:$0x3] }
   0xc   :  { %1168 = vmatpush3.bf16.msra.mxu0 %v1325_v5  ;;  %1096 = vmatprep.mubr.msk.f32.mxu0 %vm1273_vm1, %v1274_v4 }
   0xd   :  { %1169 = vmatprep.subr.bf16.mxu0 %v1272_v0 }
  0x10   :  { %1171 = vmatpush3.bf16.msra.mxu0 %v1338_v8 }
  0x11   :  { %1178 = vmatprep.subr.bf16.mxu0 %v1272_v0 }
  0xde   :  { %v106_v12 = vpop.f32.mrb[0].mxu0 }
  0xdf   :  { %v110_v13 = vadd.f32 %v106_v12, %v35_v11  ;;  %v1076_v14 = vpop.f32.mrb[1].mxu0 }
  0xe1   :  { %1208 = vtanh.f32 %v110_v13  ;;  %v997_v17 = vmul.f32 -1.442695, %v110_v13 }
  0xe3   :  { %1210 = vpow2.f32 %v997_v17 }
  0xeb   :  { %v1209_v15 = vpop.eup %1208 }
  0xec   :  { %124 = vrot.lane.b32.xlu0 %v1209_v15, %s1275_s9 }
  0xed   :  { %v1211_v18 = vpop.eup %1210 }
  0xee   :  { %v114_v19 = vadd.f32 1.0, %v1211_v18  ;;  %v1006_v18 = vld [vmem:[%s1524_s0 + $0x6] sm:$0x3] }
  0xf0   :  { %119 = vrot.lane.b32.xlu0 %v34_v16, %s1276_s10  ;;  %1212 = vrcp.f32 %v114_v19 }
  0xfa   :  { %v1213_v20 = vpop.eup %1212 }
 0x15e   :  { %v125_v21 = vpop.permute.xlu0 %124 }
 0x15f   :  { %v127_v22 = vmul.f32 %v1213_v20, %v125_v21 }
 0x161   :  { %129 = vrot.lane.b32.xlu1 %v127_v22, %s1276_s10 }
 0x162   :  { %v120_v23 = vpop.permute.xlu0 %119 }
 0x163   :  { %v122_v24 = vmul.f32 %v1213_v20, %v120_v23 }
 0x1d3   :  { %v130_v25 = vpop.permute.xlu1 %129 }
 0x1d4   :  { %v132_v26 = vadd.f32 %v130_v25, %v122_v24 }
 0x1d6   :  { %1214 = vtanh.f32 %v132_v26 }
 0x1e0   :  { %v1215_v27 = vpop.eup %1214 }
 0x1e1   :  { %135 = vrot.lane.b32.xlu1 %v1215_v27, %s1275_s9 }
 0x1e5   :  { %146 = vrot.lane.b32.xlu1 %v132_v26, %s1277_s2 }
 0x253   :  { %v136_v28 = vpop.permute.xlu1 %135 }
 0x254   :  { %v138_v29 = vmul.f32 %v1213_v20, %v136_v28 }
 0x256   :  { %140 = vrot.lane.b32.xlu0 %v138_v29, %s1276_s10 }
 0x257   :  { %v147_v30 = vpop.permute.xlu1 %146 }
 0x258   :  { %149 = vst.msk [vmem:[#allocation3] sm:$0x3] %vm25_vm0, %v147_v30 }
 0x25f   :  { %v152_v31 = vld [vmem:[#allocation3] sm:$0x3] }
 0x260   :  { %237 = vrot.lane.b32.xlu1 %v152_v31, %s1276_s10 }
 0x2c8   :  { %v141_v32 = vpop.permute.xlu0 %140 }
 0x2c9   :  { %144 = vst.msk [vmem:[#allocation2] sm:$0x3] %vm25_vm0, %v141_v32  ;;  %150 = vst.msk [vmem:[%s1525_s4] sm:$0x3] %vm25_vm0, %v141_v32 }
 0x2d0   :  { %v151_v33 = vld [vmem:[#allocation2] sm:$0x3] }
 0x2d1   :  { %1086 = vmatmul.mubr.msk.f32.vlgmr.msra.gmra.mrb[0].mxu1 %vm36_vm2, %v151_v33 }
 0x2d2   :  { %1174 = vmatpush3.bf16.msra.mxu1 %v1325_v5  ;;  %1107 = vmatprep.mubr.msk.f32.mxu1 %vm1273_vm1, %v1274_v4  ;;  %v238_v45 = vpop.permute.xlu1 %237 }
 0x2d3   :  { %1175 = vmatprep.subr.bf16.mxu1 %v1272_v0 }
 0x2d6   :  { %1177 = vmatpush3.bf16.msra.mxu1 %v1338_v8 }
 0x2d7   :  { %1184 = vmatprep.subr.bf16.mxu1 %v1272_v0 }
 0x3a4   :  { %v224_v35 = vpop.f32.mrb[0].mxu1 }
 0x3a5   :  { %v228_v36 = vadd.f32 %v998_v34, %v224_v35  ;;  %v1087_v37 = vpop.f32.mrb[1].mxu1 }
 0x3a7   :  { %1216 = vtanh.f32 %v228_v36  ;;  %v1000_v39 = vmul.f32 -1.442695, %v228_v36 }
 0x3a9   :  { %1218 = vpow2.f32 %v1000_v39 }
 0x3b1   :  { %v1217_v38 = vpop.eup %1216 }
 0x3b2   :  { %242 = vrot.lane.b32.xlu0 %v1217_v38, %s1275_s9 }
 0x3b3   :  { %v1219_v40 = vpop.eup %1218 }
 0x3b4   :  { %v232_v41 = vadd.f32 1.0, %v1219_v40  ;;  %v1010_v40 = vld [vmem:[%s1524_s0 + $0x8] sm:$0x3] }
 0x3b6   :  { %1220 = vrcp.f32 %v232_v41 }
 0x3c0   :  { %v1221_v42 = vpop.eup %1220 }
 0x3c1   :  { %v240_v46 = vmul.f32 %v1221_v42, %v238_v45 }
 0x424   :  { %v243_v43 = vpop.permute.xlu0 %242 }
 0x425   :  { %v245_v44 = vmul.f32 %v1221_v42, %v243_v43 }
 0x427   :  { %247 = vrot.lane.b32.xlu0 %v245_v44, %s1276_s10 }
 0x499   :  { %v248_v47 = vpop.permute.xlu0 %247 }
 0x49a   :  { %v250_v48 = vadd.f32 %v248_v47, %v240_v46 }
 0x49c   :  { %1222 = vtanh.f32 %v250_v48 }
 0x4a6   :  { %v1223_v49 = vpop.eup %1222 }
 0x4a7   :  { %253 = vrot.lane.b32.xlu1 %v1223_v49, %s1275_s9 }
 0x4ab   :  { %263 = vrot.lane.b32.xlu1 %v250_v48, %s1277_s2 }
 0x519   :  { %v254_v50 = vpop.permute.xlu1 %253 }
 0x51a   :  { %v256_v51 = vmul.f32 %v1221_v42, %v254_v50 }
 0x51c   :  { %258 = vrot.lane.b32.xlu0 %v256_v51, %s1276_s10 }
 0x51d   :  { %v264_v52 = vpop.permute.xlu1 %263 }
 0x51e   :  { %266 = vst.msk [vmem:[#allocation3] sm:$0x3] %vm25_vm0, %v264_v52 }
 0x525   :  { %v270_v53 = vld [vmem:[#allocation3] sm:$0x3] }
 0x526   :  { %355 = vrot.lane.b32.xlu1 %v270_v53, %s1276_s10 }
 0x58e   :  { %v259_v54 = vpop.permute.xlu0 %258 }
 0x58f   :  { %261 = vst.msk [vmem:[#allocation2] sm:$0x3] %vm25_vm0, %v259_v54  ;;  %1001 = vst.msk [vmem:[%s1525_s4 + $0x2] sm:$0x3] %vm25_vm0, %v259_v54 }
 0x596   :  { %v269_v55 = vld [vmem:[#allocation2] sm:$0x3] }
 0x597   :  { %1097 = vmatmul.mubr.msk.f32.vlgmr.msra.gmra.mrb[2].mxu0 %vm36_vm2, %v269_v55 }
 0x598   :  { %1180 = vmatpush3.bf16.msra.mxu0 %v1325_v5  ;;  %1118 = vmatprep.mubr.msk.f32.mxu0 %vm1273_vm1, %v1274_v4  ;;  %v356_v6 = vpop.permute.xlu1 %355 }
 0x599   :  { %1181 = vmatprep.subr.bf16.mxu0 %v1272_v0 }
 0x59c   :  { %1183 = vmatpush3.bf16.msra.mxu0 %v1338_v8 }
 0x59d   :  { %1190 = vmatprep.subr.bf16.mxu0 %v1272_v0 }
 0x66a   :  { %v342_v57 = vpop.f32.mrb[2].mxu0 }
 0x66b   :  { %v346_v58 = vadd.f32 %v1002_v56, %v342_v57  ;;  %v1098_v59 = vpop.f32.mrb[3].mxu0 }
 0x66d   :  { %1224 = vtanh.f32 %v346_v58  ;;  %v1004_v61 = vmul.f32 -1.442695, %v346_v58 }
 0x66f   :  { %1226 = vpow2.f32 %v1004_v61 }
 0x677   :  { %v1225_v60 = vpop.eup %1224 }
 0x678   :  { %360 = vrot.lane.b32.xlu0 %v1225_v60, %s1275_s9 }
 0x679   :  { %v1227_v62 = vpop.eup %1226 }
 0x67a   :  { %v350_v63 = vadd.f32 1.0, %v1227_v62  ;;  %v1014_v62 = vld [vmem:[%s1524_s0 + $0xa] sm:$0x3] }
 0x67c   :  { %1228 = vrcp.f32 %v350_v63 }
 0x686   :  { %v1229_v1 = vpop.eup %1228 }
 0x687   :  { %v358_v7 = vmul.f32 %v1229_v1, %v356_v6 }
 0x6ea   :  { %v361_v2 = vpop.permute.xlu0 %360 }
 0x6eb   :  { %v363_v3 = vmul.f32 %v1229_v1, %v361_v2 }
 0x6ed   :  { %365 = vrot.lane.b32.xlu0 %v363_v3, %s1276_s10 }
 0x75f   :  { %v366_v9 = vpop.permute.xlu0 %365 }
 0x760   :  { %v368_v10 = vadd.f32 %v366_v9, %v358_v7 }
 0x762   :  { %1230 = vtanh.f32 %v368_v10 }
 0x76c   :  { %v1231_v11 = vpop.eup %1230 }
 0x76d   :  { %371 = vrot.lane.b32.xlu1 %v1231_v11, %s1275_s9 }
 0x771   :  { %381 = vrot.lane.b32.xlu1 %v368_v10, %s1277_s2 }
 0x7df   :  { %v372_v12 = vpop.permute.xlu1 %371 }
 0x7e0   :  { %v374_v13 = vmul.f32 %v1229_v1, %v372_v12 }
 0x7e2   :  { %376 = vrot.lane.b32.xlu0 %v374_v13, %s1276_s10 }
 0x7e3   :  { %v382_v14 = vpop.permute.xlu1 %381 }
 0x7e4   :  { %384 = vst.msk [vmem:[#allocation3] sm:$0x3] %vm25_vm0, %v382_v14 }
 0x7eb   :  { %v388_v15 = vld [vmem:[#allocation3] sm:$0x3] }
 0x7ec   :  { %473 = vrot.lane.b32.xlu1 %v388_v15, %s1276_s10 }
 0x854   :  { %v377_v16 = vpop.permute.xlu0 %376 }
 0x855   :  { %379 = vst.msk [vmem:[#allocation2] sm:$0x3] %vm25_vm0, %v377_v16  ;;  %1005 = vst.msk [vmem:[%s1525_s4 + $0x4] sm:$0x3] %vm25_vm0, %v377_v16 }
 0x85c   :  { %v387_v17 = vld [vmem:[#allocation2] sm:$0x3] }
 0x85d   :  { %1108 = vmatmul.mubr.msk.f32.vlgmr.msra.gmra.mrb[2].mxu1 %vm36_vm2, %v387_v17 }
 0x85e   :  { %1186 = vmatpush3.bf16.msra.mxu1 %v1325_v5  ;;  %1129 = vmatprep.mubr.msk.f32.mxu1 %vm1273_vm1, %v1274_v4  ;;  %v474_v29 = vpop.permute.xlu1 %473 }
 0x85f   :  { %1187 = vmatprep.subr.bf16.mxu1 %v1272_v0 }
 0x862   :  { %1189 = vmatpush3.bf16.msra.mxu1 %v1338_v8 }
 0x863   :  { %1196 = vmatprep.subr.bf16.mxu1 %v1272_v0 }
 0x930   :  { %v460_v19 = vpop.f32.mrb[2].mxu1 }
 0x931   :  { %v464_v20 = vadd.f32 %v1006_v18, %v460_v19  ;;  %v1109_v21 = vpop.f32.mrb[3].mxu1 }
 0x933   :  { %1232 = vtanh.f32 %v464_v20  ;;  %v1008_v23 = vmul.f32 -1.442695, %v464_v20  ;;  %v1018_v20 = vld [vmem:[%s1524_s0 + $0xc] sm:$0x3] }
 0x935   :  { %1234 = vpow2.f32 %v1008_v23 }
 0x93d   :  { %v1233_v22 = vpop.eup %1232 }
 0x93e   :  { %478 = vrot.lane.b32.xlu0 %v1233_v22, %s1275_s9 }
 0x93f   :  { %v1235_v24 = vpop.eup %1234 }
 0x940   :  { %v468_v25 = vadd.f32 1.0, %v1235_v24 }
 0x942   :  { %1236 = vrcp.f32 %v468_v25 }
 0x94c   :  { %v1237_v26 = vpop.eup %1236 }
 0x94d   :  { %v476_v30 = vmul.f32 %v1237_v26, %v474_v29 }
 0x9b0   :  { %v479_v27 = vpop.permute.xlu0 %478 }
 0x9b1   :  { %v481_v28 = vmul.f32 %v1237_v26, %v479_v27 }
 0x9b3   :  { %483 = vrot.lane.b32.xlu0 %v481_v28, %s1276_s10 }
 0xa25   :  { %v484_v31 = vpop.permute.xlu0 %483 }
 0xa26   :  { %v486_v32 = vadd.f32 %v484_v31, %v476_v30 }
 0xa28   :  { %1238 = vtanh.f32 %v486_v32 }
 0xa32   :  { %v1239_v33 = vpop.eup %1238 }
 0xa33   :  { %489 = vrot.lane.b32.xlu1 %v1239_v33, %s1275_s9 }
 0xa37   :  { %499 = vrot.lane.b32.xlu1 %v486_v32, %s1277_s2 }
 0xaa5   :  { %v490_v34 = vpop.permute.xlu1 %489 }
 0xaa6   :  { %v492_v35 = vmul.f32 %v1237_v26, %v490_v34 }
 0xaa8   :  { %494 = vrot.lane.b32.xlu0 %v492_v35, %s1276_s10 }
 0xaa9   :  { %v500_v36 = vpop.permute.xlu1 %499 }
 0xaaa   :  { %502 = vst.msk [vmem:[#allocation3] sm:$0x3] %vm25_vm0, %v500_v36 }
 0xab1   :  { %v506_v37 = vld [vmem:[#allocation3] sm:$0x3] }
 0xab2   :  { %591 = vrot.lane.b32.xlu1 %v506_v37, %s1276_s10 }
 0xb1a   :  { %v495_v38 = vpop.permute.xlu0 %494 }
 0xb1b   :  { %497 = vst.msk [vmem:[#allocation2] sm:$0x3] %vm25_vm0, %v495_v38  ;;  %1009 = vst.msk [vmem:[%s1525_s4 + $0x6] sm:$0x3] %vm25_vm0, %v495_v38 }
 0xb22   :  { %v505_v39 = vld [vmem:[#allocation2] sm:$0x3] }
 0xb23   :  { %1119 = vmatmul.mubr.msk.f32.vlgmr.msra.gmra.mrb[4].mxu0 %vm36_vm2, %v505_v39 }
 0xb24   :  { %1192 = vmatpush3.bf16.msra.mxu0 %v1325_v5  ;;  %1140 = vmatprep.mubr.msk.f32.mxu0 %vm1273_vm1, %v1274_v4  ;;  %v592_v51 = vpop.permute.xlu1 %591 }
 0xb25   :  { %1193 = vmatprep.subr.bf16.mxu0 %v1272_v0 }
 0xb28   :  { %1195 = vmatpush3.bf16.msra.mxu0 %v1338_v8 }
 0xbf6   :  { %v578_v41 = vpop.f32.mrb[4].mxu0 }
 0xbf7   :  { %v582_v42 = vadd.f32 %v1010_v40, %v578_v41  ;;  %v1120_v43 = vpop.f32.mrb[5].mxu0 }
 0xbf9   :  { %1240 = vtanh.f32 %v582_v42  ;;  %v1012_v45 = vmul.f32 -1.442695, %v582_v42  ;;  %v1022_v42 = vld [vmem:[%s1524_s0 + $0xe] sm:$0x3] }
 0xbfb   :  { %1242 = vpow2.f32 %v1012_v45 }
 0xc03   :  { %v1241_v44 = vpop.eup %1240 }
 0xc04   :  { %596 = vrot.lane.b32.xlu0 %v1241_v44, %s1275_s9 }
 0xc05   :  { %v1243_v46 = vpop.eup %1242 }
 0xc06   :  { %v586_v47 = vadd.f32 1.0, %v1243_v46 }
 0xc08   :  { %1244 = vrcp.f32 %v586_v47 }
 0xc12   :  { %v1245_v48 = vpop.eup %1244 }
 0xc13   :  { %v594_v52 = vmul.f32 %v1245_v48, %v592_v51 }
 0xc76   :  { %v597_v49 = vpop.permute.xlu0 %596 }
 0xc77   :  { %v599_v50 = vmul.f32 %v1245_v48, %v597_v49 }
 0xc79   :  { %601 = vrot.lane.b32.xlu0 %v599_v50, %s1276_s10 }
 0xceb   :  { %v602_v53 = vpop.permute.xlu0 %601 }
 0xcec   :  { %v604_v54 = vadd.f32 %v602_v53, %v594_v52 }
 0xcee   :  { %1246 = vtanh.f32 %v604_v54 }
 0xcf8   :  { %v1247_v55 = vpop.eup %1246 }
 0xcf9   :  { %607 = vrot.lane.b32.xlu1 %v1247_v55, %s1275_s9 }
 0xcfd   :  { %617 = vrot.lane.b32.xlu1 %v604_v54, %s1277_s2 }
 0xd6b   :  { %v608_v56 = vpop.permute.xlu1 %607 }
 0xd6c   :  { %v610_v57 = vmul.f32 %v1245_v48, %v608_v56 }
 0xd6e   :  { %612 = vrot.lane.b32.xlu0 %v610_v57, %s1276_s10 }
 0xd6f   :  { %v618_v58 = vpop.permute.xlu1 %617 }
 0xd70   :  { %620 = vst.msk [vmem:[#allocation3] sm:$0x3] %vm25_vm0, %v618_v58 }
 0xd77   :  { %v624_v59 = vld [vmem:[#allocation3] sm:$0x3] }
 0xd78   :  { %709 = vrot.lane.b32.xlu1 %v624_v59, %s1276_s10 }
 0xde0   :  { %v613_v60 = vpop.permute.xlu0 %612 }
 0xde1   :  { %615 = vst.msk [vmem:[#allocation2] sm:$0x3] %vm25_vm0, %v613_v60  ;;  %1013 = vst.msk [vmem:[%s1525_s4 + $0x8] sm:$0x3] %vm25_vm0, %v613_v60 }
 0xde8   :  { %v623_v61 = vld [vmem:[#allocation2] sm:$0x3] }
 0xde9   :  { %1130 = vmatmul.mubr.msk.f32.vlgmr.msra.gmra.mrb[4].mxu1 %vm36_vm2, %v623_v61 }
 0xdea   :  { %1198 = vmatpush3.bf16.msra.mxu1 %v1325_v5  ;;  %1151 = vmatprep.mubr.msk.f32.mxu1 %vm1273_vm1, %v1274_v4 }
 0xdeb   :  { %1199 = vmatprep.subr.bf16.mxu1 %v1272_v0 }
 0xdee   :  { %1201 = vmatpush3.bf16.msra.mxu1 %v1338_v8  ;;  %v710_v8 = vpop.permute.xlu1 %709 }
 0xebc   :  { %v696_v63 = vpop.f32.mrb[4].mxu1 }
 0xebd   :  { %v700_v1 = vadd.f32 %v1014_v62, %v696_v63  ;;  %v1131_v2 = vpop.f32.mrb[5].mxu1 }
 0xebf   :  { %1248 = vtanh.f32 %v700_v1  ;;  %v1016_v6 = vmul.f32 -1.442695, %v700_v1 }
 0xec1   :  { %1250 = vpow2.f32 %v1016_v6 }
 0xec9   :  { %v1249_v3 = vpop.eup %1248 }
 0xeca   :  { %714 = vrot.lane.b32.xlu0 %v1249_v3, %s1275_s9 }
 0xecb   :  { %v1251_v5 = vpop.eup %1250 }
 0xecc   :  { %v704_v7 = vadd.f32 1.0, %v1251_v5 }
 0xece   :  { %1252 = vrcp.f32 %v704_v7 }
 0xed8   :  { %v1253_v4 = vpop.eup %1252 }
 0xed9   :  { %v712_v10 = vmul.f32 %v1253_v4, %v710_v8 }
 0xf3c   :  { %v715_v0 = vpop.permute.xlu0 %714 }
 0xf3d   :  { %v717_v9 = vmul.f32 %v1253_v4, %v715_v0 }
 0xf3f   :  { %719 = vrot.lane.b32.xlu0 %v717_v9, %s1276_s10 }
 0xfb1   :  { %v720_v11 = vpop.permute.xlu0 %719 }
 0xfb2   :  { %v722_v12 = vadd.f32 %v720_v11, %v712_v10 }
 0xfb4   :  { %1254 = vtanh.f32 %v722_v12 }
 0xfbe   :  { %v1255_v13 = vpop.eup %1254 }
 0xfbf   :  { %725 = vrot.lane.b32.xlu1 %v1255_v13, %s1275_s9 }
 0xfc3   :  { %735 = vrot.lane.b32.xlu1 %v722_v12, %s1277_s2 }
0x1031   :  { %v726_v14 = vpop.permute.xlu1 %725 }
0x1032   :  { %v728_v15 = vmul.f32 %v1253_v4, %v726_v14 }
0x1034   :  { %730 = vrot.lane.b32.xlu0 %v728_v15, %s1276_s10 }
0x1035   :  { %v736_v16 = vpop.permute.xlu1 %735 }
0x1036   :  { %738 = vst.msk [vmem:[#allocation3] sm:$0x3] %vm25_vm0, %v736_v16 }
0x103d   :  { %v742_v17 = vld [vmem:[#allocation3] sm:$0x3] }
0x103e   :  { %827 = vrot.lane.b32.xlu1 %v742_v17, %s1276_s10 }
0x10a6   :  { %v731_v18 = vpop.permute.xlu0 %730 }
0x10a7   :  { %733 = vst.msk [vmem:[#allocation2] sm:$0x3] %vm25_vm0, %v731_v18  ;;  %1017 = vst.msk [vmem:[%s1525_s4 + $0xa] sm:$0x3] %vm25_vm0, %v731_v18 }
0x10ae   :  { %v741_v19 = vld [vmem:[#allocation2] sm:$0x3] }
0x10af   :  { %1141 = vmatmul.mubr.msk.f32.vlgmr.msra.gmra.mrb[6].mxu0 %vm36_vm2, %v741_v19 }
0x10b0   :  { %v828_v31 = vpop.permute.xlu1 %827 }
0x1182   :  { %v814_v21 = vpop.f32.mrb[6].mxu0 }
0x1183   :  { %v818_v22 = vadd.f32 %v1018_v20, %v814_v21  ;;  %v1142_v23 = vpop.f32.mrb[7].mxu0 }
0x1185   :  { %1256 = vtanh.f32 %v818_v22  ;;  %v1020_v25 = vmul.f32 -1.442695, %v818_v22 }
0x1187   :  { %1258 = vpow2.f32 %v1020_v25 }
0x118f   :  { %v1257_v24 = vpop.eup %1256 }
0x1190   :  { %832 = vrot.lane.b32.xlu0 %v1257_v24, %s1275_s9 }
0x1191   :  { %v1259_v26 = vpop.eup %1258 }
0x1192   :  { %v822_v27 = vadd.f32 1.0, %v1259_v26 }
0x1194   :  { %1260 = vrcp.f32 %v822_v27 }
0x119e   :  { %v1261_v28 = vpop.eup %1260 }
0x119f   :  { %v830_v32 = vmul.f32 %v1261_v28, %v828_v31 }
0x1202   :  { %v833_v29 = vpop.permute.xlu0 %832 }
0x1203   :  { %v835_v30 = vmul.f32 %v1261_v28, %v833_v29 }
0x1205   :  { %837 = vrot.lane.b32.xlu0 %v835_v30, %s1276_s10 }
0x1277   :  { %v838_v33 = vpop.permute.xlu0 %837 }
0x1278   :  { %v840_v34 = vadd.f32 %v838_v33, %v830_v32 }
0x127a   :  { %1262 = vtanh.f32 %v840_v34 }
0x1284   :  { %v1263_v35 = vpop.eup %1262 }
0x1285   :  { %843 = vrot.lane.b32.xlu1 %v1263_v35, %s1275_s9 }
0x1289   :  { %853 = vrot.lane.b32.xlu1 %v840_v34, %s1277_s2 }
0x12f7   :  { %v844_v36 = vpop.permute.xlu1 %843 }
0x12f8   :  { %v846_v37 = vmul.f32 %v1261_v28, %v844_v36 }
0x12fa   :  { %848 = vrot.lane.b32.xlu0 %v846_v37, %s1276_s10 }
0x12fb   :  { %v854_v38 = vpop.permute.xlu1 %853 }
0x12fc   :  { %856 = vst.msk [vmem:[#allocation3] sm:$0x3] %vm25_vm0, %v854_v38 }
0x1303   :  { %v860_v39 = vld [vmem:[#allocation3] sm:$0x3] }
0x1304   :  { %945 = vrot.lane.b32.xlu1 %v860_v39, %s1276_s10 }
0x136c   :  { %v849_v40 = vpop.permute.xlu0 %848 }
0x136d   :  { %851 = vst.msk [vmem:[#allocation2] sm:$0x3] %vm25_vm0, %v849_v40  ;;  %1021 = vst.msk [vmem:[%s1525_s4 + $0xc] sm:$0x3] %vm25_vm0, %v849_v40 }
0x1374   :  { %v859_v41 = vld [vmem:[#allocation2] sm:$0x3] }
0x1375   :  { %1152 = vmatmul.mubr.msk.f32.vlgmr.msra.gmra.mrb[6].mxu1 %vm36_vm2, %v859_v41 }
0x1376   :  { %v946_v53 = vpop.permute.xlu1 %945 }
0x1448   :  { %v932_v43 = vpop.f32.mrb[6].mxu1 }
0x1449   :  { %v936_v44 = vadd.f32 %v1022_v42, %v932_v43  ;;  %v1153_v45 = vpop.f32.mrb[7].mxu1 }
0x144b   :  { %1264 = vtanh.f32 %v936_v44  ;;  %v1024_v47 = vmul.f32 -1.442695, %v936_v44 }
0x144d   :  { %1266 = vpow2.f32 %v1024_v47 }
0x1455   :  { %v1265_v46 = vpop.eup %1264 }
0x1456   :  { %950 = vrot.lane.b32.xlu0 %v1265_v46, %s1275_s9 }
0x1457   :  { %v1267_v48 = vpop.eup %1266 }
0x1458   :  { %v940_v49 = vadd.f32 1.0, %v1267_v48 }
0x145a   :  { %1268 = vrcp.f32 %v940_v49 }
0x1464   :  { %v1269_v50 = vpop.eup %1268 }
0x1465   :  { %v948_v54 = vmul.f32 %v1269_v50, %v946_v53 }
0x14c8   :  { %v951_v51 = vpop.permute.xlu0 %950 }
0x14c9   :  { %v953_v52 = vmul.f32 %v1269_v50, %v951_v51 }
0x14cb   :  { %955 = vrot.lane.b32.xlu0 %v953_v52, %s1276_s10 }
0x153d   :  { %v956_v55 = vpop.permute.xlu0 %955 }
0x153e   :  { %v958_v56 = vadd.f32 %v956_v55, %v948_v54 }
0x1540   :  { %1270 = vtanh.f32 %v958_v56 }
0x154a   :  { %v1271_v57 = vpop.eup %1270 }
0x154b   :  { %961 = vrot.lane.b32.xlu1 %v1271_v57, %s1275_s9 }
0x154f   :  { %971 = vrot.lane.b32.xlu1 %v958_v56, %s1277_s2 }
0x15bd   :  { %v962_v58 = vpop.permute.xlu1 %961 }
0x15be   :  { %v964_v59 = vmul.f32 %v1269_v50, %v962_v58 }
0x15c0   :  { %966 = vrot.lane.b32.xlu0 %v964_v59, %s1276_s10 }
0x15c1   :  { %v972_v60 = vpop.permute.xlu1 %971 }
0x15c2   :  { %974 = vst.msk [vmem:[#allocation3] sm:$0x3] %vm25_vm0, %v972_v60 }
0x15c9   :  { %v982_v61 = vld [vmem:[#allocation3] sm:$0x3] }
0x15ca   :  { %983 = vst.msk [vmem:[%s1526_s6] sm:$0x3] %vm25_vm0, %v982_v61 }
0x1632   :  { %v967_v62 = vpop.permute.xlu0 %966 }
0x1633   :  { %969 = vst.msk [vmem:[#allocation2] sm:$0x3] %vm25_vm0, %v967_v62  ;;  %1025 = vst.msk [vmem:[%s1525_s4 + $0xe] sm:$0x3] %vm25_vm0, %v967_v62 }
0x163a   :  { %v980_v63 = vld [vmem:[#allocation2] sm:$0x3] }
0x163b   :  { %981 = vst.msk [vmem:[%s1527_s5] sm:$0x3] %vm25_vm0, %v980_v63 }

</bundles_post_ra>
